<compile_context>
chip_gen: v7x
topology: tpu7x:2x2x1
jax: 0.10.0
libtpu: 0.0.40
codegen_flags: <defaults>
</compile_context>

<pallas_src>
import functools
import math

import jax
import jax.numpy as jnp
from jax.experimental import pallas as pl
from jax.experimental.pallas import tpu as pltpu


def cross_transformer_kernel(x1_ref, x2_ref,
                             wq_ref, bq_ref,
                             wk_ref, bk_ref,
                             wv_ref, bv_ref,
                             wo_ref, bo_ref,
                             gamma_ref, beta_ref,
                             out_ref, attnw_ref,
                             *, n_head, eps, compute_dtype):
    """One (batch element, L-tile) step: full cross-attention over all S keys."""
    TL, E = x1_ref.shape              # (TL, E)  query tile, f32 (residual path)
    S = x2_ref.shape[0]               # (S, E)   key/value source, compute dtype
    H = n_head
    dh = E // H
    cd = compute_dtype

    x1 = x1_ref[...]                  # f32
    x2 = x2_ref[...]                  # cd

    # --- Projections (MXU).  Scale 1/sqrt(dh) already folded into wq / bq. ---
    q = jnp.dot(x1.astype(cd), wq_ref[...],
                preferred_element_type=jnp.float32) + bq_ref[0]
    k = jnp.dot(x2, wk_ref[...],
                preferred_element_type=jnp.float32) + bk_ref[0]
    v = jnp.dot(x2, wv_ref[...],
                preferred_element_type=jnp.float32) + bv_ref[0]

    # --- Head-major rearrangement: one transpose per tensor, no per-batch loop. ---
    qh = pltpu.einshape("lhd->hld", q.reshape(TL, H, dh))     # (H, TL, dh)
    kh = pltpu.einshape("shd->hsd", k.reshape(S, H, dh))      # (H, S, dh)
    vh = pltpu.einshape("shd->hsd", v.reshape(S, H, dh))      # (H, S, dh)

    # --- Scores + softmax (f32 elementwise math). ---
    s = jnp.einsum("hld,hsd->hls", qh.astype(cd), kh.astype(cd),
                   preferred_element_type=jnp.float32)        # (H, TL, S)
    m = jnp.max(s, axis=-1, keepdims=True)
    e = jnp.exp(s - m)
    denom = jnp.sum(e, axis=-1, keepdims=True)
    p = e * (1.0 / denom)             # exact normalization: attn weights are an output
    # TODO(synk): attention-probability dropout skipped (inference semantics).

    # Head-averaged attention weights (PyTorch average_attn_weights=True).
    attnw_ref[...] = (jnp.sum(p, axis=0) * (1.0 / H)).astype(attnw_ref.dtype)

    # --- Context (MXU) + output projection + residual + LayerNorm. ---
    ctx = jnp.einsum("hls,hsd->hld", p.astype(cd), vh.astype(cd),
                     preferred_element_type=jnp.float32)      # (H, TL, dh)
    ctx = pltpu.einshape("hld->lhd", ctx).reshape(TL, E)

    proj = jnp.dot(ctx.astype(cd), wo_ref[...],
                   preferred_element_type=jnp.float32) + bo_ref[0]

    y = x1 + proj                     # TODO(synk): dropout1 skipped (inference semantics).
    mean = jnp.mean(y, axis=-1, keepdims=True)
    var = jnp.mean(jnp.square(y - mean), axis=-1, keepdims=True)
    yn = (y - mean) * jax.lax.rsqrt(var + eps)
    out_ref[...] = (yn * gamma_ref[0] + beta_ref[0]).astype(out_ref.dtype)


def cross_transformer(input1, input2, params, *, n_head, eps=1e-5,
                      matmul_dtype=jnp.bfloat16,
                      attn_weights_dtype=jnp.float32,
                      block_l=128, vmem_limit_bytes=None):
    """input1: (L, N, E), input2: (S, N, E) (PyTorch seq-first convention).

    Returns (output (L, N, E), attn_weight (N, L, S)).

    matmul_dtype:       MXU operand dtype (f32 accumulation).  bf16 is the fast path on
                        v6e/v7x (and valid on v5e); pass jnp.float32 for bit-level fidelity.
    attn_weights_dtype: dtype of the (N, L, S) attention-weight writeback (pass bf16 to
                        halve the dominant HBM write at large L*S).
    vmem_limit_bytes:   optional explicit scoped-VMEM limit (re-derive per generation:
                        ~48-56 MiB max on v7x's 64 MiB, default 16 MiB scoped on v5e).
    """
    L, N, E = input1.shape
    S, N2, E2 = input2.shape
    assert N2 == N and E2 == E
    assert E % n_head == 0
    dh = E // n_head
    scale = 1.0 / math.sqrt(dh)
    f32 = jnp.float32

    # Batch-first internal layout -> dense (TL, E)/(S, E) tiles with L/S on the sublane
    # axis; the batch dim is squeezed onto the grid (layout plumbing, not compute).
    x1b = jnp.transpose(input1.astype(f32), (1, 0, 2))          # (N, L, E) f32 (residual)
    x2b = jnp.transpose(input2, (1, 0, 2)).astype(matmul_dtype)  # (N, S, E) compute dtype

    # Weight prep: pre-transpose so the kernel computes x @ W; fold 1/sqrt(dh) into Wq/bq.
    wq = (params["wq"].T.astype(f32) * scale).astype(matmul_dtype)   # (E, E)
    wk = params["wk"].T.astype(matmul_dtype)                         # (E, E)
    wv = params["wv"].T.astype(matmul_dtype)                         # (E, E)
    wo = params["wo"].T.astype(matmul_dtype)                         # (E, E)
    bq = (params["bq"].astype(f32) * scale).reshape(1, E)
    bk = params["bk"].astype(f32).reshape(1, E)
    bv = params["bv"].astype(f32).reshape(1, E)
    bo = params["bo"].astype(f32).reshape(1, E)
    gamma = params["gamma"].astype(f32).reshape(1, E)
    beta = params["beta"].astype(f32).reshape(1, E)

    # Query-length tile: full L for short sequences, otherwise 128 rows (multiple of 8).
    tl = L if L <= block_l else block_l
    assert tl == L or tl % 8 == 0
    grid = (N, pl.cdiv(L, tl))
    # TODO(synk): for very long S, add an inner flash-style K/V streaming loop instead of
    # holding the full (S, E) tile and (H, TL, S) scores in VMEM.

    kernel = functools.partial(cross_transformer_kernel,
                               n_head=n_head, eps=eps, compute_dtype=matmul_dtype)

    x_map = lambda n, l: (n, l, 0)          # x1 / out / attnw: follow (batch, L-tile)
    kv_map = lambda n, l: (n, 0, 0)         # x2: constant along the L axis (stays resident)
    w_map = lambda n, l: (0, 0)             # weights/biases: constant across the grid

    in_specs = [
        pl.BlockSpec((None, tl, E), x_map),     # input1 tile   (TL, E)
        pl.BlockSpec((None, S, E), kv_map),     # input2        (S, E)
        pl.BlockSpec((E, E), w_map),            # Wq (scaled)
        pl.BlockSpec((1, E), w_map),            # bq (scaled)
        pl.BlockSpec((E, E), w_map),            # Wk
        pl.BlockSpec((1, E), w_map),            # bk
        pl.BlockSpec((E, E), w_map),            # Wv
        pl.BlockSpec((1, E), w_map),            # bv
        pl.BlockSpec((E, E), w_map),            # Wout
        pl.BlockSpec((1, E), w_map),            # bout
        pl.BlockSpec((1, E), w_map),            # ln gamma
        pl.BlockSpec((1, E), w_map),            # ln beta
    ]
    out_specs = [
        pl.BlockSpec((None, tl, E), x_map),     # output tile   (TL, E)
        pl.BlockSpec((None, tl, S), x_map),     # attn weights  (TL, S)
    ]
    out_shape = (
        jax.ShapeDtypeStruct((N, L, E), f32),
        jax.ShapeDtypeStruct((N, L, S), attn_weights_dtype),
    )

    # Advisory cost estimate so XLA schedules the surrounding graph sensibly.
    msize = jnp.dtype(matmul_dtype).itemsize
    asize = jnp.dtype(attn_weights_dtype).itemsize
    flops = (2 * N * L * E * E            # Q projection
             + 2 * 2 * N * S * E * E      # K, V projections
             + 2 * 2 * N * L * S * E      # scores + context
             + 2 * N * L * E * E)         # output projection
    transcendentals = N * n_head * L * S + N * L
    bytes_accessed = (N * L * E * 4 + N * S * E * msize + 4 * E * E * msize
                      + 6 * E * 4 + N * L * E * 4 + N * L * S * asize)
    cost = pl.CostEstimate(flops=int(flops),
                           transcendentals=int(transcendentals),
                           bytes_accessed=int(bytes_accessed))

    out_b, attnw = pl.pallas_call(
        kernel,
        out_shape=out_shape,
        grid_spec=pltpu.PrefetchScalarGridSpec(
            num_scalar_prefetch=0,
            grid=grid,
            in_specs=in_specs,
            out_specs=out_specs,
        ),
        compiler_params=pltpu.CompilerParams(
            dimension_semantics=("parallel", "parallel"),
            vmem_limit_bytes=vmem_limit_bytes),
        cost_estimate=cost,
    )(x1b, x2b, wq, bq, wk, bk, wv, bv, wo, bo, gamma, beta)

    # Back to PyTorch's seq-first convention; attn weights are already (N, L, S).
    return jnp.transpose(out_b, (1, 0, 2)), attnw


def cross_transformer_reference(input1, input2, params, *, n_head, eps=1e-5):
    """Pure-JAX reference (mirrors nn.MultiheadAttention eval semantics)."""
    L, N, E = input1.shape
    S = input2.shape[0]
    dh = E // n_head
    x1 = input1.astype(jnp.float32)
    x2 = input2.astype(jnp.float32)
    q = jnp.einsum("lne,fe->lnf", x1, params["wq"]) + params["bq"]
    k = jnp.einsum("sne,fe->snf", x2, params["wk"]) + params["bk"]
    v = jnp.einsum("sne,fe->snf", x2, params["wv"]) + params["bv"]
    q = q / math.sqrt(dh)
    qh = q.reshape(L, N, n_head, dh)
    kh = k.reshape(S, N, n_head, dh)
    vh = v.reshape(S, N, n_head, dh)
    s = jnp.einsum("lnhd,snhd->nhls", qh, kh)
    p = jax.nn.softmax(s, axis=-1)
    attnw = jnp.mean(p, axis=1)
    o = jnp.einsum("nhls,snhd->lnhd", p, vh).reshape(L, N, E)
    proj = jnp.einsum("lne,fe->lnf", o, params["wo"]) + params["bo"]
    y = x1 + proj
    mean = jnp.mean(y, axis=-1, keepdims=True)
    var = jnp.mean((y - mean) ** 2, axis=-1, keepdims=True)
    yn = (y - mean) * jax.lax.rsqrt(var + eps) * params["gamma"] + params["beta"]
    return yn, attnw


def init_params(key, d_model):
    """Deterministic init mirroring nn.MultiheadAttention defaults:
    in_proj_weight ~ xavier_uniform, biases = 0, LayerNorm gamma=1 / beta=0."""
    k_in, k_out = jax.random.split(key)
    limit_in = math.sqrt(6.0 / (3 * d_model + d_model))
    in_proj = jax.random.uniform(k_in, (3 * d_model, d_model),
                                 minval=-limit_in, maxval=limit_in,
                                 dtype=jnp.float32)
    limit_out = math.sqrt(6.0 / (2 * d_model))
    wo = jax.random.uniform(k_out, (d_model, d_model),
                            minval=-limit_out, maxval=limit_out,
                            dtype=jnp.float32)
    zeros = jnp.zeros((d_model,), jnp.float32)
    return {
        "wq": in_proj[0 * d_model:1 * d_model],
        "wk": in_proj[1 * d_model:2 * d_model],
        "wv": in_proj[2 * d_model:3 * d_model],
        "bq": zeros, "bk": zeros, "bv": zeros,
        "wo": wo, "bo": zeros,
        "gamma": jnp.ones((d_model,), jnp.float32),
        "beta": zeros,
    }


if __name__ == "__main__":
    d_model, n_head = 32, 4
    L, S, N = 8, 8, 2

    key = jax.random.PRNGKey(0)
    k1, k2, kp = jax.random.split(key, 3)
    input1 = jax.random.normal(k1, (L, N, d_model), jnp.float32)
    input2 = jax.random.normal(k2, (S, N, d_model), jnp.float32)
    params = init_params(kp, d_model)

    ref_out, ref_attn = cross_transformer_reference(input1, input2, params, n_head=n_head)

    # f32 MXU path: near bit-level agreement with the reference.
    out32, attn32 = cross_transformer(input1, input2, params, n_head=n_head,
                                      matmul_dtype=jnp.float32)
    jax.block_until_ready((out32, attn32))
    assert out32.shape == (L, N, d_model)
    assert attn32.shape == (N, L, S)
    assert jnp.allclose(out32, ref_out, atol=2e-3, rtol=2e-3)
    assert jnp.allclose(attn32, ref_attn, atol=2e-3, rtol=2e-3)

    # Default bf16-operand / f32-accumulation fast path (v6e/v7x preferred).
    out_bf, attn_bf = cross_transformer(input1, input2, params, n_head=n_head)
    jax.block_until_ready((out_bf, attn_bf))
    assert jnp.allclose(out_bf, ref_out, atol=5e-2, rtol=5e-2)
    assert jnp.allclose(attn_bf, ref_attn, atol=5e-2, rtol=5e-2)

    print("KERNEL_OK")
</pallas_src>

<mosaic_0001>
module attributes {stable_mosaic.version = 11 : i64} {
  func.func @cross_transformer_kernel(%arg0: i32, %arg1: i32, %arg2: memref<1x8x32xf32, #tpu.memory_space<vmem>>, %arg3: memref<1x8x32xf32, #tpu.memory_space<vmem>>, %arg4: memref<32x32xf32, #tpu.memory_space<vmem>>, %arg5: memref<1x32xf32, #tpu.memory_space<vmem>>, %arg6: memref<32x32xf32, #tpu.memory_space<vmem>>, %arg7: memref<1x32xf32, #tpu.memory_space<vmem>>, %arg8: memref<32x32xf32, #tpu.memory_space<vmem>>, %arg9: memref<1x32xf32, #tpu.memory_space<vmem>>, %arg10: memref<32x32xf32, #tpu.memory_space<vmem>>, %arg11: memref<1x32xf32, #tpu.memory_space<vmem>>, %arg12: memref<1x32xf32, #tpu.memory_space<vmem>>, %arg13: memref<1x32xf32, #tpu.memory_space<vmem>>, %arg14: memref<1x8x32xf32, #tpu.memory_space<vmem>>, %arg15: memref<1x8x8xf32, #tpu.memory_space<vmem>>) attributes {dimension_semantics = [#tpu.dimension_semantics<parallel>, #tpu.dimension_semantics<parallel>], iteration_bounds = array<i64: 2, 1>, scalar_prefetch = 0 : i64, scratch_operands = 0 : i64, tpu.core_type = #tpu.core_type<tc>, window_params = [{transform_indices = @transform_0, window_bounds = array<i64: 1, 8, 32>}, {transform_indices = @transform_1, window_bounds = array<i64: 1, 8, 32>}, {pipeline_mode = #tpu.pipeline_mode<synchronous>, transform_indices = @transform_2, window_bounds = array<i64: 32, 32>}, {pipeline_mode = #tpu.pipeline_mode<synchronous>, transform_indices = @transform_3, window_bounds = array<i64: 1, 32>}, {pipeline_mode = #tpu.pipeline_mode<synchronous>, transform_indices = @transform_4, window_bounds = array<i64: 32, 32>}, {pipeline_mode = #tpu.pipeline_mode<synchronous>, transform_indices = @transform_5, window_bounds = array<i64: 1, 32>}, {pipeline_mode = #tpu.pipeline_mode<synchronous>, transform_indices = @transform_6, window_bounds = array<i64: 32, 32>}, {pipeline_mode = #tpu.pipeline_mode<synchronous>, transform_indices = @transform_7, window_bounds = array<i64: 1, 32>}, {pipeline_mode = #tpu.pipeline_mode<synchronous>, transform_indices = @transform_8, window_bounds = array<i64: 32, 32>}, {pipeline_mode = #tpu.pipeline_mode<synchronous>, transform_indices = @transform_9, window_bounds = array<i64: 1, 32>}, {pipeline_mode = #tpu.pipeline_mode<synchronous>, transform_indices = @transform_10, window_bounds = array<i64: 1, 32>}, {pipeline_mode = #tpu.pipeline_mode<synchronous>, transform_indices = @transform_11, window_bounds = array<i64: 1, 32>}, {transform_indices = @transform_12, window_bounds = array<i64: 1, 8, 32>}, {transform_indices = @transform_13, window_bounds = array<i64: 1, 8, 8>}]} {
    %c0 = arith.constant 0 : index
    %c0_0 = arith.constant 0 : index
    %c0_1 = arith.constant 0 : index
    %0 = vector.load %arg2[%c0, %c0_0, %c0_1] : memref<1x8x32xf32, #tpu.memory_space<vmem>>, vector<1x8x32xf32>
    %1 = vector.shape_cast %0 : vector<1x8x32xf32> to vector<8x32xf32>
    %c0_2 = arith.constant 0 : index
    %c0_3 = arith.constant 0 : index
    %c0_4 = arith.constant 0 : index
    %2 = vector.load %arg3[%c0_2, %c0_3, %c0_4] : memref<1x8x32xf32, #tpu.memory_space<vmem>>, vector<1x8x32xf32>
    %3 = vector.shape_cast %2 : vector<1x8x32xf32> to vector<8x32xf32>
    %c0_5 = arith.constant 0 : index
    %c0_6 = arith.constant 0 : index
    %4 = vector.load %arg4[%c0_5, %c0_6] : memref<32x32xf32, #tpu.memory_space<vmem>>, vector<32x32xf32>
    %cst = arith.constant dense<0.000000e+00> : vector<8x32xf32>
    %5 = tpu.matmul %1, %4, %cst {dimension_numbers = #tpu.dot_dimension_numbers<[1], [0], [0], [1], [0, 0, 1, 1], [], []>} : vector<8x32xf32>, vector<32x32xf32>, vector<8x32xf32> -> vector<8x32xf32>
    %c0_7 = arith.constant 0 : index
    %c0_8 = arith.constant 0 : index
    %6 = vector.load %arg5[%c0_7, %c0_8] : memref<1x32xf32, #tpu.memory_space<vmem>>, vector<1x32xf32>
    %7 = vector.shape_cast %6 : vector<1x32xf32> to vector<32xf32>
    %8 = vector.shape_cast %7 : vector<32xf32> to vector<1x32xf32>
    %9 = vector.broadcast %8 : vector<1x32xf32> to vector<8x32xf32>
    %10 = arith.addf %5, %9 : vector<8x32xf32>
    %c0_9 = arith.constant 0 : index
    %c0_10 = arith.constant 0 : index
    %11 = vector.load %arg6[%c0_9, %c0_10] : memref<32x32xf32, #tpu.memory_space<vmem>>, vector<32x32xf32>
    %cst_11 = arith.constant dense<0.000000e+00> : vector<8x32xf32>
    %12 = tpu.matmul %3, %11, %cst_11 {dimension_numbers = #tpu.dot_dimension_numbers<[1], [0], [0], [1], [0, 0, 1, 1], [], []>} : vector<8x32xf32>, vector<32x32xf32>, vector<8x32xf32> -> vector<8x32xf32>
    %c0_12 = arith.constant 0 : index
    %c0_13 = arith.constant 0 : index
    %13 = vector.load %arg7[%c0_12, %c0_13] : memref<1x32xf32, #tpu.memory_space<vmem>>, vector<1x32xf32>
    %14 = vector.shape_cast %13 : vector<1x32xf32> to vector<32xf32>
    %15 = vector.shape_cast %14 : vector<32xf32> to vector<1x32xf32>
    %16 = vector.broadcast %15 : vector<1x32xf32> to vector<8x32xf32>
    %17 = arith.addf %12, %16 : vector<8x32xf32>
    %c0_14 = arith.constant 0 : index
    %c0_15 = arith.constant 0 : index
    %18 = vector.load %arg8[%c0_14, %c0_15] : memref<32x32xf32, #tpu.memory_space<vmem>>, vector<32x32xf32>
    %cst_16 = arith.constant dense<0.000000e+00> : vector<8x32xf32>
    %19 = tpu.matmul %3, %18, %cst_16 {dimension_numbers = #tpu.dot_dimension_numbers<[1], [0], [0], [1], [0, 0, 1, 1], [], []>} : vector<8x32xf32>, vector<32x32xf32>, vector<8x32xf32> -> vector<8x32xf32>
    %c0_17 = arith.constant 0 : index
    %c0_18 = arith.constant 0 : index
    %20 = vector.load %arg9[%c0_17, %c0_18] : memref<1x32xf32, #tpu.memory_space<vmem>>, vector<1x32xf32>
    %21 = vector.shape_cast %20 : vector<1x32xf32> to vector<32xf32>
    %22 = vector.shape_cast %21 : vector<32xf32> to vector<1x32xf32>
    %23 = vector.broadcast %22 : vector<1x32xf32> to vector<8x32xf32>
    %24 = arith.addf %19, %23 : vector<8x32xf32>
    %25 = vector.shape_cast %10 : vector<8x32xf32> to vector<8x4x8xf32>
    %26 = tpu.transpose %25, [1, 0, 2] : vector<8x4x8xf32> -> vector<4x8x8xf32>
    %27 = vector.shape_cast %17 : vector<8x32xf32> to vector<8x4x8xf32>
    %28 = tpu.transpose %27, [1, 0, 2] : vector<8x4x8xf32> -> vector<4x8x8xf32>
    %29 = vector.shape_cast %24 : vector<8x32xf32> to vector<8x4x8xf32>
    %30 = tpu.transpose %29, [1, 0, 2] : vector<8x4x8xf32> -> vector<4x8x8xf32>
    "tpu.trace_start"() <{level = 10 : i32, message = "hld,hsd->hls"}> : () -> ()
    %cst_19 = arith.constant dense<0.000000e+00> : vector<4x8x8xf32>
    %31 = tpu.matmul %26, %28, %cst_19 {dimension_numbers = #tpu.dot_dimension_numbers<[2], [2], [1], [1], [0, 0, 0, 1, 1, 1], [0], [0]>} : vector<4x8x8xf32>, vector<4x8x8xf32>, vector<4x8x8xf32> -> vector<4x8x8xf32>
    "tpu.trace_stop"() : () -> ()
    %cst_20 = arith.constant dense<0xFF800000> : vector<4x8xf32>
    %32 = vector.multi_reduction <maximumf>, %31, %cst_20 [2] : vector<4x8x8xf32> to vector<4x8xf32>
    %33 = vector.shape_cast %32 : vector<4x8xf32> to vector<4x8x1xf32>
    %34 = vector.broadcast %33 : vector<4x8x1xf32> to vector<4x8x8xf32>
    %35 = arith.subf %31, %34 : vector<4x8x8xf32>
    %36 = math.exp %35 : vector<4x8x8xf32>
    %cst_21 = arith.constant dense<0.000000e+00> : vector<4x8xf32>
    %37 = vector.multi_reduction <add>, %36, %cst_21 [2] : vector<4x8x8xf32> to vector<4x8xf32>
    %38 = vector.shape_cast %37 : vector<4x8xf32> to vector<4x8x1xf32>
    %cst_22 = arith.constant 1.000000e+00 : f32
    %39 = vector.broadcast %cst_22 : f32 to vector<4x8x1xf32>
    %40 = arith.divf %39, %38 : vector<4x8x1xf32>
    %41 = vector.broadcast %40 : vector<4x8x1xf32> to vector<4x8x8xf32>
    %42 = arith.mulf %36, %41 : vector<4x8x8xf32>
    %cst_23 = arith.constant dense<0.000000e+00> : vector<8x8xf32>
    %43 = vector.multi_reduction <add>, %42, %cst_23 [0] : vector<4x8x8xf32> to vector<8x8xf32>
    %cst_24 = arith.constant 2.500000e-01 : f32
    %44 = vector.broadcast %cst_24 : f32 to vector<8x8xf32>
    %45 = arith.mulf %43, %44 : vector<8x8xf32>
    %c0_25 = arith.constant 0 : index
    %c0_26 = arith.constant 0 : index
    %c0_27 = arith.constant 0 : index
    %46 = vector.load %arg15[%c0_25, %c0_26, %c0_27] : memref<1x8x8xf32, #tpu.memory_space<vmem>>, vector<1x8x8xf32>
    %47 = vector.shape_cast %46 : vector<1x8x8xf32> to vector<8x8xf32>
    %48 = vector.shape_cast %45 : vector<8x8xf32> to vector<1x8x8xf32>
    tpu.vector_store %arg15[%c0_25, %c0_26, %c0_27], %48 {strides = array<i32>} : memref<1x8x8xf32, #tpu.memory_space<vmem>>, vector<1x8x8xf32>,
    "tpu.trace_start"() <{level = 10 : i32, message = "hls,hsd->hld"}> : () -> ()
    %cst_28 = arith.constant dense<0.000000e+00> : vector<4x8x8xf32>
    %49 = tpu.matmul %42, %30, %cst_28 {dimension_numbers = #tpu.dot_dimension_numbers<[2], [1], [1], [2], [0, 0, 0, 1, 1, 2], [0], [0]>} : vector<4x8x8xf32>, vector<4x8x8xf32>, vector<4x8x8xf32> -> vector<4x8x8xf32>
    "tpu.trace_stop"() : () -> ()
    %50 = tpu.transpose %49, [1, 0, 2] : vector<4x8x8xf32> -> vector<8x4x8xf32>
    %51 = vector.shape_cast %50 : vector<8x4x8xf32> to vector<8x32xf32>
    %c0_29 = arith.constant 0 : index
    %c0_30 = arith.constant 0 : index
    %52 = vector.load %arg10[%c0_29, %c0_30] : memref<32x32xf32, #tpu.memory_space<vmem>>, vector<32x32xf32>
    %cst_31 = arith.constant dense<0.000000e+00> : vector<8x32xf32>
    %53 = tpu.matmul %51, %52, %cst_31 {dimension_numbers = #tpu.dot_dimension_numbers<[1], [0], [0], [1], [0, 0, 1, 1], [], []>} : vector<8x32xf32>, vector<32x32xf32>, vector<8x32xf32> -> vector<8x32xf32>
    %c0_32 = arith.constant 0 : index
    %c0_33 = arith.constant 0 : index
    %54 = vector.load %arg11[%c0_32, %c0_33] : memref<1x32xf32, #tpu.memory_space<vmem>>, vector<1x32xf32>
    %55 = vector.shape_cast %54 : vector<1x32xf32> to vector<32xf32>
    %56 = vector.shape_cast %55 : vector<32xf32> to vector<1x32xf32>
    %57 = vector.broadcast %56 : vector<1x32xf32> to vector<8x32xf32>
    %58 = arith.addf %53, %57 : vector<8x32xf32>
    %59 = arith.addf %1, %58 : vector<8x32xf32>
    %cst_34 = arith.constant dense<0.000000e+00> : vector<8xf32>
    %60 = vector.multi_reduction <add>, %59, %cst_34 [1] : vector<8x32xf32> to vector<8xf32>
    %61 = vector.shape_cast %60 : vector<8xf32> to vector<8x1xf32>
    %cst_35 = arith.constant 3.200000e+01 : f32
    %62 = vector.broadcast %cst_35 : f32 to vector<8x1xf32>
    %63 = arith.divf %61, %62 : vector<8x1xf32>
    %64 = vector.broadcast %63 : vector<8x1xf32> to vector<8x32xf32>
    %65 = arith.subf %59, %64 : vector<8x32xf32>
    %66 = arith.mulf %65, %65 : vector<8x32xf32>
    %cst_36 = arith.constant dense<0.000000e+00> : vector<8xf32>
    %67 = vector.multi_reduction <add>, %66, %cst_36 [1] : vector<8x32xf32> to vector<8xf32>
    %68 = vector.shape_cast %67 : vector<8xf32> to vector<8x1xf32>
    %cst_37 = arith.constant 3.200000e+01 : f32
    %69 = vector.broadcast %cst_37 : f32 to vector<8x1xf32>
    %70 = arith.divf %68, %69 : vector<8x1xf32>
    %71 = vector.broadcast %63 : vector<8x1xf32> to vector<8x32xf32>
    %72 = arith.subf %59, %71 : vector<8x32xf32>
    %cst_38 = arith.constant 9.99999974E-6 : f32
    %73 = vector.broadcast %cst_38 : f32 to vector<8x1xf32>
    %74 = arith.addf %70, %73 : vector<8x1xf32>
    %75 = math.rsqrt %74 : vector<8x1xf32>
    %76 = vector.broadcast %75 : vector<8x1xf32> to vector<8x32xf32>
    %77 = arith.mulf %72, %76 : vector<8x32xf32>
    %c0_39 = arith.constant 0 : index
    %c0_40 = arith.constant 0 : index
    %78 = vector.load %arg12[%c0_39, %c0_40] : memref<1x32xf32, #tpu.memory_space<vmem>>, vector<1x32xf32>
    %79 = vector.shape_cast %78 : vector<1x32xf32> to vector<32xf32>
    %80 = vector.shape_cast %79 : vector<32xf32> to vector<1x32xf32>
    %81 = vector.broadcast %80 : vector<1x32xf32> to vector<8x32xf32>
    %82 = arith.mulf %77, %81 : vector<8x32xf32>
    %c0_41 = arith.constant 0 : index
    %c0_42 = arith.constant 0 : index
    %83 = vector.load %arg13[%c0_41, %c0_42] : memref<1x32xf32, #tpu.memory_space<vmem>>, vector<1x32xf32>
    %84 = vector.shape_cast %83 : vector<1x32xf32> to vector<32xf32>
    %85 = vector.shape_cast %84 : vector<32xf32> to vector<1x32xf32>
    %86 = vector.broadcast %85 : vector<1x32xf32> to vector<8x32xf32>
    %87 = arith.addf %82, %86 : vector<8x32xf32>
    %c0_43 = arith.constant 0 : index
    %c0_44 = arith.constant 0 : index
    %c0_45 = arith.constant 0 : index
    %88 = vector.load %arg14[%c0_43, %c0_44, %c0_45] : memref<1x8x32xf32, #tpu.memory_space<vmem>>, vector<1x8x32xf32>
    %89 = vector.shape_cast %88 : vector<1x8x32xf32> to vector<8x32xf32>
    %90 = vector.shape_cast %87 : vector<8x32xf32> to vector<1x8x32xf32>
    tpu.vector_store %arg14[%c0_43, %c0_44, %c0_45], %90 {strides = array<i32>} : memref<1x8x32xf32, #tpu.memory_space<vmem>>, vector<1x8x32xf32>,
    return
  }
  func.func @transform_0(%arg0: i32, %arg1: i32) -> (i32, i32, i32) {
    %c0_i32 = arith.constant 0 : i32
    %c0_i32_0 = arith.constant 0 : i32
    return %arg0, %arg1, %c0_i32 : i32, i32, i32
  }
  func.func @transform_1(%arg0: i32, %arg1: i32) -> (i32, i32, i32) {
    %c0_i32 = arith.constant 0 : i32
    %c0_i32_0 = arith.constant 0 : i32
    %c0_i32_1 = arith.constant 0 : i32
    return %arg0, %c0_i32, %c0_i32_0 : i32, i32, i32
  }
  func.func @transform_2(%arg0: i32, %arg1: i32) -> (i32, i32) {
    %c0_i32 = arith.constant 0 : i32
    %c0_i32_0 = arith.constant 0 : i32
    %c0_i32_1 = arith.constant 0 : i32
    return %c0_i32, %c0_i32_0 : i32, i32
  }
  func.func @transform_3(%arg0: i32, %arg1: i32) -> (i32, i32) {
    %c0_i32 = arith.constant 0 : i32
    %c0_i32_0 = arith.constant 0 : i32
    %c0_i32_1 = arith.constant 0 : i32
    return %c0_i32, %c0_i32_0 : i32, i32
  }
  func.func @transform_4(%arg0: i32, %arg1: i32) -> (i32, i32) {
    %c0_i32 = arith.constant 0 : i32
    %c0_i32_0 = arith.constant 0 : i32
    %c0_i32_1 = arith.constant 0 : i32
    return %c0_i32, %c0_i32_0 : i32, i32
  }
  func.func @transform_5(%arg0: i32, %arg1: i32) -> (i32, i32) {
    %c0_i32 = arith.constant 0 : i32
    %c0_i32_0 = arith.constant 0 : i32
    %c0_i32_1 = arith.constant 0 : i32
    return %c0_i32, %c0_i32_0 : i32, i32
  }
  func.func @transform_6(%arg0: i32, %arg1: i32) -> (i32, i32) {
    %c0_i32 = arith.constant 0 : i32
    %c0_i32_0 = arith.constant 0 : i32
    %c0_i32_1 = arith.constant 0 : i32
    return %c0_i32, %c0_i32_0 : i32, i32
  }
  func.func @transform_7(%arg0: i32, %arg1: i32) -> (i32, i32) {
    %c0_i32 = arith.constant 0 : i32
    %c0_i32_0 = arith.constant 0 : i32
    %c0_i32_1 = arith.constant 0 : i32
    return %c0_i32, %c0_i32_0 : i32, i32
  }
  func.func @transform_8(%arg0: i32, %arg1: i32) -> (i32, i32) {
    %c0_i32 = arith.constant 0 : i32
    %c0_i32_0 = arith.constant 0 : i32
    %c0_i32_1 = arith.constant 0 : i32
    return %c0_i32, %c0_i32_0 : i32, i32
  }
  func.func @transform_9(%arg0: i32, %arg1: i32) -> (i32, i32) {
    %c0_i32 = arith.constant 0 : i32
    %c0_i32_0 = arith.constant 0 : i32
    %c0_i32_1 = arith.constant 0 : i32
    return %c0_i32, %c0_i32_0 : i32, i32
  }
  func.func @transform_10(%arg0: i32, %arg1: i32) -> (i32, i32) {
    %c0_i32 = arith.constant 0 : i32
    %c0_i32_0 = arith.constant 0 : i32
    %c0_i32_1 = arith.constant 0 : i32
    return %c0_i32, %c0_i32_0 : i32, i32
  }
  func.func @transform_11(%arg0: i32, %arg1: i32) -> (i32, i32) {
    %c0_i32 = arith.constant 0 : i32
    %c0_i32_0 = arith.constant 0 : i32
    %c0_i32_1 = arith.constant 0 : i32
    return %c0_i32, %c0_i32_0 : i32, i32
  }
  func.func @transform_12(%arg0: i32, %arg1: i32) -> (i32, i32, i32) {
    %c0_i32 = arith.constant 0 : i32
    %c0_i32_0 = arith.constant 0 : i32
    return %arg0, %arg1, %c0_i32 : i32, i32, i32
  }
  func.func @transform_13(%arg0: i32, %arg1: i32) -> (i32, i32, i32) {
    %c0_i32 = arith.constant 0 : i32
    %c0_i32_0 = arith.constant 0 : i32
    return %arg0, %arg1, %c0_i32 : i32, i32, i32
  }
}

</mosaic_0001>

<bundles_post_ra>
// kernel: tpu_custom_call.1
= control target key start
LH: loop header
LB: loop body
LE: loop exit
PB: predicated region body
PF: predicated region fallthrough
CT: control target
= control target key end

     0   :  { %s3696_s0 = inlined_call_operand.hbm [shape: f32[2,8,32], index: 0, kind: input, shape index: {}]   ;;  %s3697_s1 = inlined_call_operand.hbm [shape: f32[2,8,32], index: 1, kind: input, shape index: {}]   ;;  %s3698_s2 = inlined_call_operand.hbm [shape: f32[32,32], index: 2, kind: input, shape index: {}]   ;;  %s3699_s3 = inlined_call_operand.vmem [shape: f32[1,32], index: 3, kind: input, shape index: {}]   ;;  %s3700_s4 = inlined_call_operand.hbm [shape: f32[32,32], index: 4, kind: input, shape index: {}]   ;;  %s3701_s5 = inlined_call_operand.vmem [shape: f32[1,32], index: 5, kind: input, shape index: {}]   ;;  %s3702_s6 = inlined_call_operand.hbm [shape: f32[32,32], index: 6, kind: input, shape index: {}]   ;;  %s3703_s7 = inlined_call_operand.vmem [shape: f32[1,32], index: 7, kind: input, shape index: {}]   ;;  %s3704_s8 = inlined_call_operand.hbm [shape: f32[32,32], index: 8, kind: input, shape index: {}]   ;;  %s3705_s9 = inlined_call_operand.vmem [shape: f32[1,32], index: 9, kind: input, shape index: {}]   ;;  %s3706_s10 = inlined_call_operand.vmem [shape: f32[1,32], index: 10, kind: input, shape index: {}]   ;;  %s3707_s11 = inlined_call_operand.vmem [shape: f32[1,32], index: 11, kind: input, shape index: {}]   ;;  %s3708_s12 = inlined_call_operand.hbm [shape: f32[2,8,32], index: 12, kind: output, shape index: {0}]   ;;  %s3709_s13 = inlined_call_operand.hbm [shape: f32[2,8,8], index: 13, kind: output, shape index: {1}]  }
   0x1   :  { %3718 = sst [smem:[#allocation25_spill]] %s3698_s2 }
   0x2   :  { %3719 = sst [smem:[#allocation26_spill]] %s3700_s4 }
   0x3   :  { %3720 = sst [smem:[#allocation27_spill]] %s3702_s6 }
   0x4   :  { %3721 = sst [smem:[#allocation28_spill]] %s3703_s7 }
   0x5   :  { %3722 = sst [smem:[#allocation29_spill]] %s3704_s8 }
   0x6   :  { %3723 = sst [smem:[#allocation30_spill]] %s3705_s9 }
   0x7   :  { %3724 = sst [smem:[#allocation31_spill]] %s3706_s10 }
   0x8   :  { %3725 = sst [smem:[#allocation32_spill]] %s3707_s11 }
   0x9   :  { %3726 = sst [smem:[#allocation33_spill]] %s3708_s12 }
   0xa   :  { %3727 = sst [smem:[#allocation34_spill]] %s3709_s13 }
   0xb   :  { %19 = vsyncpa [#allocation3], 0 }
   0xc   :  { %21 = vsyncpa [#allocation3 + $0x1], 0 }
   0xd   :  { %22 = vsyncpa [#allocation6], 0 }
   0xe   :  { %24 = vsyncpa [#allocation6 + $0x1], 0 }
   0xf   :  { %25 = vsyncpa [#allocation9], 0 }
  0x10   :  { %26 = vsyncpa [#allocation12], 0 }
  0x11   :  { %27 = vsyncpa [#allocation4], 0 }
  0x12   :  { %29 = vsyncpa [#allocation4 + $0x1], 0 }
  0x13   :  { %30 = vsyncpa [#allocation15], 0 }
  0x14   :  { %32 = vsyncpa [#allocation15 + $0x1], 0  ;;  %s3142_s25 = smov 0   ;;  %s3144_s26 = smov 0  }
  0x15   :  { %s3146_s27 = smov 0   ;;  %s3148_s28 = smov 0  }
  0x16   :  { %s3150_s29 = smov 0   ;;  %s3152_s30 = smov 0  }
  0x17 LB: > { %3728 = sst [smem:[#allocation23_spill]] %s3041_s28  ;;  %s3173_s14 = sadd.s32 4294967295, %s3049_s30   ;;  %s3049_s30 = sphi %s3152_s30, %s38_s30   ;;  %s3045_s29 = sphi %s3150_s29, %s3766_s29   ;;  %s3041_s28 = sphi %s3148_s28, %s3765_s28   ;;  %s3037_s27 = sphi %s3146_s27, %s3764_s27   ;;  %s3033_s26 = sphi %s3144_s26, %s3763_s26   ;;  %s3029_s25 = sphi %s3142_s25, %s3762_s25  }
  0x18   : > { %p2404_p0 = scmp.ge.s32.totalorder %s3049_s30, 1  ;;  %p3713_p1 = scmp.eq.s32.totalorder %s3173_s14, 0 }
  0x19   : > { %p375_p2 = scmp.lt.s32.totalorder %s3049_s30, 3  ;;  %s3051_s16 = smov [#allocation7]  }
  0x1a   : > { %s387_s17 = sshll.u32 %s3051_s16, 4  ;;  %s3052_s19 = smov [#allocation8]   ;;  %s3182_s17 = int_to_ptr.vmem [resolvable:$true] %s387_s17 }
  0x1b   : > { %p3178_p3 = pnand %p2404_p0, %p375_p2  ;;  %s403_s20 = sshll.u32 %s3052_s19, 4  ;;  %s3193_s20 = int_to_ptr.vmem [resolvable:$true] %s403_s20 }
  0x1c   : > { %s3053_s21 = smov [#allocation10]   ;;  %s3731_s2 = sld [smem:[#allocation25_spill]] }
  0x1d   : > { %s3729_s15 = scalar_select %p3178_p3, 1, 0 }
  0x1e   : > { %p2627_p4 = pneg %p3178_p3  ;;  %s3195_s22 = sshll.u32 %s3053_s21, 4  ;;  %s420_s22 = int_to_ptr.vmem [resolvable:$true] %s3195_s22 }
  0x20   : > { %p3189_p6 = pnand %p2627_p4, %p3713_p1 }
  0x22   : > { %s2747_s16 = scalar_lea.hbm %s3731_s2, 512  ;;  %p3205_p8 = pneg %p3189_p6 }
  0x23   : > { %p2748_p7 = scmp.ne.s32.totalorder %s3731_s2, %s2747_s16  ;;  %p2754_p11 = scmp.lt.u32.totalorder %s2747_s16, %s3731_s2 }
  0x25   : > { %p2750_p9 = pnand %p3205_p8, %p2748_p7 }
  0x27   : > { %p2751_p10 = pneg %p2750_p9 }
  0x29   : > { %p2756_p12 = pnand %p2754_p11, %p2751_p10 }
  0x2b   : > { %2759 = shalt.err (!%p2756_p12)
}
  0x2c   : > { %s2760_s11 = scalar_lea.vmem %s3182_s17, 512  ;;  %p2768_p4 = scmp.lt.s32.totalorder %s3182_s17, %s3182_s17 }
  0x2d   : > { %p2761_p13 = scmp.ne.s32.totalorder %s3182_s17, %s2760_s11  ;;  %p2769_p5 = scmp.lt.s32.totalorder %s2760_s11, %s2760_s11 }
  0x2f   : > { %p2763_p0 = pnand %p2761_p13, %p3205_p8  ;;  %p2770_p7 = por %p2769_p5, %p2768_p4 }
  0x31   : > { %p2764_p2 = pneg %p2763_p0 }
  0x33   : > { %p2771_p9 = pnand %p2770_p7, %p2764_p2 }
  0x35   : > { %2774 = shalt.err (!%p2771_p9)
}
  0x36   : > { %s3054_s12 = smov 128   ;;  %s3055_s23 = smov 8  }
  0x37   : > { %2630 = dma.hbm_to_vmem [thread:$0]  (!%p3189_p6), %s3731_s2, 512, %s3182_s17, [#allocation6], %s3054_s12, %s3054_s12, %s3055_s23  }
  0x38   : > { %s3733_s4 = sld [smem:[#allocation26_spill]] }
  0x3e   : > { %s2775_s11 = scalar_lea.hbm %s3733_s4, 512 }
  0x3f   : > { %p2776_p5 = scmp.ne.s32.totalorder %s3733_s4, %s2775_s11  ;;  %p2782_p12 = scmp.lt.u32.totalorder %s2775_s11, %s3733_s4 }
  0x41   : > { %p2778_p10 = pnand %p2776_p5, %p3205_p8 }
  0x43   : > { %p2779_p11 = pneg %p2778_p10 }
  0x45   : > { %p2784_p13 = pnand %p2782_p12, %p2779_p11 }
  0x47   : > { %2787 = shalt.err (!%p2784_p13)
}
  0x48   : > { %s2788_s17 = scalar_lea.vmem %s3193_s20, 512  ;;  %p2796_p7 = scmp.lt.s32.totalorder %s3193_s20, %s3193_s20 }
  0x49   : > { %p2789_p0 = scmp.ne.s32.totalorder %s3193_s20, %s2788_s17  ;;  %p2797_p9 = scmp.lt.s32.totalorder %s2788_s17, %s2788_s17 }
  0x4b   : > { %p2791_p2 = pnand %p2789_p0, %p3205_p8  ;;  %p2798_p5 = por %p2797_p9, %p2796_p7 }
  0x4d   : > { %p2792_p4 = pneg %p2791_p2 }
  0x4f   : > { %p2799_p10 = pnand %p2798_p5, %p2792_p4 }
  0x51   : > { %2802 = shalt.err (!%p2799_p10)
}
  0x52   : > { %2633 = dma.hbm_to_vmem [thread:$0]  (!%p3189_p6), %s3733_s4, 512, %s3193_s20, [#allocation9], %s3054_s12, %s3054_s12, %s3055_s23  }
  0x53   : > { %s3734_s6 = sld [smem:[#allocation27_spill]] }
  0x59   : > { %s2803_s24 = scalar_lea.hbm %s3734_s6, 512 }
  0x5a   : > { %p2804_p11 = scmp.ne.s32.totalorder %s3734_s6, %s2803_s24  ;;  %p2810_p0 = scmp.lt.u32.totalorder %s2803_s24, %s3734_s6 }
  0x5c   : > { %p2806_p12 = pnand %p2804_p11, %p3205_p8 }
  0x5e   : > { %p2807_p13 = pneg %p2806_p12 }
  0x60   : > { %p2812_p2 = pnand %p2810_p0, %p2807_p13 }
  0x62   : > { %2815 = shalt.err (!%p2812_p2)
}
  0x63   : > { %s2816_s17 = scalar_lea.vmem %s420_s22, 512  ;;  %p2824_p5 = scmp.lt.s32.totalorder %s420_s22, %s420_s22 }
  0x64   : > { %p2817_p4 = scmp.ne.s32.totalorder %s420_s22, %s2816_s17  ;;  %p2825_p10 = scmp.lt.s32.totalorder %s2816_s17, %s2816_s17 }
  0x66   : > { %p2819_p7 = pnand %p2817_p4, %p3205_p8  ;;  %p2826_p1 = por %p2825_p10, %p2824_p5 }
  0x68   : > { %p2820_p9 = pneg %p2819_p7 }
  0x6a   : > { %p2827_p3 = pnand %p2826_p1, %p2820_p9 }
  0x6c   : > { %2830 = shalt.err (!%p2827_p3)
}
  0x6d   : > { %2636 = dma.hbm_to_vmem [thread:$0]  (!%p3189_p6), %s3734_s6, 512, %s420_s22, [#allocation9], %s3054_s12, %s3054_s12, %s3055_s23  }
  0x6e   : > { %s3056_s9 = smov [#allocation11]   ;;  %s3735_s8 = sld [smem:[#allocation29_spill]] }
  0x6f   : > { %s435_s13 = sshll.u32 %s3056_s9, 4  ;;  %s436_s13 = int_to_ptr.vmem [resolvable:$true] %s435_s13 }
  0x74   : > { %s2831_s16 = scalar_lea.hbm %s3735_s8, 512 }
  0x75   : > { %p2832_p1 = scmp.ne.s32.totalorder %s3735_s8, %s2831_s16  ;;  %p2838_p12 = scmp.lt.u32.totalorder %s2831_s16, %s3735_s8 }
  0x77   : > { %p2834_p3 = pnand %p2832_p1, %p3205_p8 }
  0x79   : > { %p2835_p11 = pneg %p2834_p3 }
  0x7b   : > { %p2840_p13 = pnand %p2838_p12, %p2835_p11 }
  0x7d   : > { %2843 = shalt.err (!%p2840_p13)
}
  0x7e   : > { %s2844_s22 = scalar_lea.vmem %s436_s13, 512  ;;  %p2852_p7 = scmp.lt.s32.totalorder %s436_s13, %s436_s13 }
  0x7f   : > { %p2845_p0 = scmp.ne.s32.totalorder %s436_s13, %s2844_s22  ;;  %p2853_p9 = scmp.lt.s32.totalorder %s2844_s22, %s2844_s22 }
  0x81   : > { %p2847_p2 = pnand %p2845_p0, %p3205_p8  ;;  %p2854_p5 = por %p2853_p9, %p2852_p7 }
  0x83   : > { %p2848_p4 = pneg %p2847_p2 }
  0x85   : > { %p2855_p10 = pnand %p2854_p5, %p2848_p4 }
  0x87   : > { %2858 = shalt.err (!%p2855_p10)
}
  0x88   : > { %2639 = dma.hbm_to_vmem [thread:$0]  (!%p3189_p6), %s3735_s8, 512, %s436_s13, [#allocation12], %s3054_s12, %s3054_s12, %s3055_s23  }
  0x89   : > { %s2403_s10 = sadd.s32 4294967294, %s3049_s30   ;;  %s50_s18 = sadd.s32 1, %s3045_s29 }
  0x8a   : > { %p52_p8 = scmp.ge.s32.totalorder %s50_s18, 2  ;;  %s59_s9 = sadd.s32 1, %s3037_s27 }
  0x8b   : > { %p66_p1 = scmp.ne.s32.totalorder %s3037_s27, %s3033_s26  ;;  %p67_p3 = scmp.eq.s32.totalorder %s3049_s30, 0 }
  0x8c   : > { %s3768_s18 = smov (%p52_p8, %s50_s18), 0  ;;  %p72_p12 = scmp.ne.s32.totalorder %s3033_s26, %s3029_s25 }
  0x8d   : > { %3736 = sst [smem:[#allocation24_spill]] %s3768_s18  ;;  %p3306_p11 = por %p67_p3, %p66_p1 }
  0x8e   : > { %s54_s12 = ssub.s32 %s3045_s29, %s3768_s18  ;;  %p334_p6 = scmp.eq.s32.totalorder %s3173_s14, 1 }
  0x8f   : > { %p57_p13 = scmp.eq.s32.totalorder %s54_s12, 0  ;;  %p3738_p0 = scmp.eq.s32.totalorder %s3173_s14, 0 }
  0x90   : > { %p3321_p4 = por %p334_p6, %p66_p1  ;;  %p340_p7 = scmp.eq.s32.totalorder %s2403_s10, 1 }
  0x91   : > { %p3317_p2 = por %p3738_p0, %p72_p12  ;;  %p2658_p5 = scmp.lt.s32.totalorder %s3049_s30, 2 }
  0x92   : > { %s3740_s13 = scalar_select %p3321_p4, 1, 0 }
  0x93   : > { %s3739_s23 = scalar_select %p3317_p2, 1, 0 }
  0x94   : > { %s3326_s24 = scalar_select %p57_p13, %s3037_s27, %s59_s9  }
  0x95   : > { %p3328_p9 = por %p340_p7, %p72_p12  ;;  %s458_s19 = sand.u32 1, %s3037_s27  }
  0x96   : > { %s2411_s21 = sshll.u32 %s3045_s29, 7  ;;  %s3335_s11 = sshll.u32 %s458_s19, 3 }
  0x97   : > { %s3741_s16 = scalar_select %p3328_p9, 1, 0 }
  0x98   : > { %s3340_s20 = scalar_lea.hbm %s3696_s0, %s2411_s21  ;;  %s462_s7 = scalar_lea.vmem [#allocation2], %s3335_s11 }
  0x99   : > { %s470_s10 = sshll.u32 %s462_s7, 4  ;;  %p3345_p10 = pnand %p2658_p5, %p3306_p11  ;;  %s3349_s10 = int_to_ptr.vmem [resolvable:$true] %s470_s10 }
  0x9a   : > { %s3354_s22 = scalar_lea.hbm %s3697_s1, %s2411_s21  ;;  %s459_s2 = scalar_lea.sflag [#allocation3], %s458_s19 }
  0x9b   : > { %s2859_s4 = scalar_lea.hbm %s3340_s20, 128  ;;  %p2861_p1 = pneg %p3345_p10 }
  0x9c   : > { %p2860_p8 = scmp.ne.s32.totalorder %s3340_s20, %s2859_s4  ;;  %s2864_s6 = scalar_lea.hbm %s3696_s0, 256 }
  0x9d   : > { %p2865_p12 = scmp.lt.u32.totalorder %s3340_s20, %s3696_s0  ;;  %p2866_p6 = scmp.lt.u32.totalorder %s2864_s6, %s2859_s4 }
  0x9e   : > { %p2862_p3 = pnand %p2861_p1, %p2860_p8  ;;  %p2868_p0 = scmp.lt.u32.totalorder %s2859_s4, %s3340_s20 }
  0x9f   : > { %p2867_p13 = por %p2866_p6, %p2865_p12 }
  0xa0   : > { %p2863_p11 = pneg %p2862_p3 }
  0xa1   : > { %p2869_p7 = por %p2868_p0, %p2867_p13 }
  0xa3   : > { %p2870_p5 = pnand %p2869_p7, %p2863_p11 }
  0xa5   : > { %2873 = shalt.err (!%p2870_p5)
}
  0xa6   : > { %s2874_s19 = scalar_lea.vmem %s3349_s10, 128  ;;  %s3057_s21 = smov [#allocation2]  }
  0xa7   : > { %p2875_p8 = scmp.ne.s32.totalorder %s3349_s10, %s2874_s19  ;;  %s2879_s12 = sshll.u32 %s3057_s21, 4  ;;  %s2880_s12 = int_to_ptr.vmem [resolvable:$false] %s2879_s12 }
  0xa8   : > { %s2881_s8 = scalar_lea.vmem %s2880_s12, 256  ;;  %p2882_p4 = scmp.lt.s32.totalorder %s3349_s10, %s2880_s12 }
  0xa9   : > { %p2877_p3 = pnand %p2875_p8, %p2861_p1  ;;  %p2883_p12 = scmp.lt.s32.totalorder %s2881_s8, %s2874_s19 }
  0xab   : > { %p2878_p9 = pneg %p2877_p3  ;;  %p2884_p6 = por %p2883_p12, %p2882_p4 }
  0xad   : > { %p2885_p13 = pnand %p2884_p6, %p2878_p9 }
  0xaf   : > { %2888 = shalt.err (!%p2885_p13)
}
  0xb0   : > { %2643 = dma.hbm_to_vmem [thread:$0]  (!%p3345_p10), %s3340_s20, 128, %s3349_s10, %s459_s2  }
  0xb1   : > { %s477_s4 = sand.u32 1, %s3049_s30   ;;  %s481_s6 = scalar_lea.vmem [#allocation5], %s3335_s11 }
  0xb2   : > { %s488_s18 = sshll.u32 %s481_s6, 4  ;;  %s478_s17 = scalar_lea.sflag [#allocation6], %s477_s4  ;;  %s489_s18 = int_to_ptr.vmem [resolvable:$true] %s488_s18 }
  0xb3   : > { %s2889_s28 = scalar_lea.hbm %s3354_s22, 128  ;;  %s2894_s21 = scalar_lea.hbm %s3697_s1, 256 }
  0xb4   : > { %p2890_p4 = scmp.ne.s32.totalorder %s3354_s22, %s2889_s28  ;;  %p2895_p0 = scmp.lt.u32.totalorder %s3354_s22, %s3697_s1 }
  0xb5   : > { %p2896_p7 = scmp.lt.u32.totalorder %s2894_s21, %s2889_s28  ;;  %p2898_p8 = scmp.lt.u32.totalorder %s2889_s28, %s3354_s22 }
  0xb6   : > { %p2892_p9 = pnand %p2890_p4, %p2861_p1 }
  0xb7   : > { %p2897_p5 = por %p2896_p7, %p2895_p0 }
  0xb8   : > { %p2893_p11 = pneg %p2892_p9 }
  0xb9   : > { %p2899_p3 = por %p2898_p8, %p2897_p5 }
  0xbb   : > { %p2900_p12 = pnand %p2899_p3, %p2893_p11 }
  0xbd   : > { %2903 = shalt.err (!%p2900_p12)
}
  0xbe   : > { %s2904_s2 = scalar_lea.vmem %s489_s18, 128  ;;  %s3058_s11 = smov [#allocation5]  }
  0xbf   : > { %p2905_p6 = scmp.ne.s32.totalorder %s489_s18, %s2904_s2  ;;  %s2909_s20 = sshll.u32 %s3058_s11, 4  ;;  %s2910_s20 = int_to_ptr.vmem [resolvable:$false] %s2909_s20 }
  0xc0   : > { %s2911_s10 = scalar_lea.vmem %s2910_s20, 256  ;;  %p2912_p9 = scmp.lt.s32.totalorder %s489_s18, %s2910_s20 }
  0xc1   : > { %p2907_p13 = pnand %p2905_p6, %p2861_p1  ;;  %p2913_p2 = scmp.lt.s32.totalorder %s2911_s10, %s2904_s2 }
  0xc3   : > { %p2908_p4 = pneg %p2907_p13  ;;  %p2914_p0 = por %p2913_p2, %p2912_p9 }
  0xc5   : > { %p2915_p7 = pnand %p2914_p0, %p2908_p4 }
  0xc7   : > { %2918 = shalt.err (!%p2915_p7)
}
  0xc8   : > { %2646 = dma.hbm_to_vmem [thread:$0]  (!%p3345_p10), %s3354_s22, 128, %s489_s18, %s478_s17  }
  0xc9   : > { %p3743_p11 = scmp.ne.s32.totalorder %s3729_s15, 0 }
  0xca   : > { %s3405_s4 = sand.u32 (!%p3743_p11), 1, %s3033_s26   ;;  %p3744_p2 = scmp.ne.s32.totalorder (!%p3743_p11), %s3739_s23, 0 }
  0xcb   : > { %497 = sbr.rel (%p3743_p11) target bundleno = 2037 (0x7f5), region = 68  ;;  %s3408_s6 = sshll.u32 (!%p3743_p11), %s3405_s4, 3 }
  0xcc   : > { %s500_s28 = scalar_lea.sflag (!%p3743_p11), [#allocation3], %s3405_s4  ;;  %s503_s7 = scalar_lea.vmem (!%p3743_p11), [#allocation2], %s3408_s6 }
  0xd2   : > { %3000 = dma.done.wait (%p3744_p2), %s500_s28, 128  }
  0xd3   : > { %3002 = vsyncadd (%p3744_p2), %s500_s28, 4294967168  ;;  %s508_s15 = sand.u32 1, %s3173_s14   ;;  %s512_s22 = scalar_lea.vmem [#allocation5], %s3408_s6 }
  0xd4   : > { %s509_s9 = scalar_lea.sflag [#allocation6], %s508_s15 }
  0xd5   : > { %3004 = dma.done.wait (%p3744_p2), %s509_s9, 128  }
  0xd6   : > { %3006 = vsyncadd (%p3744_p2), %s509_s9, 4294967168  ;;  %p3745_p10 = scmp.eq.s32.totalorder %s3173_s14, 0 }
  0xd8   : > { %3008 = dma.done.wait (%p3745_p10), [#allocation6], 512   ;;  %p3746_p1 = pmov %p3745_p10 }
  0xda   : > { %3010 = vsyncadd (%p3746_p1), [#allocation6], 4294966784  ;;  %p3747_p5 = pmov %p3746_p1 }
  0xdb   : > { %p3748_p8 = pmov %p3746_p1 }
  0xdc   : > { %3012 = dma.done.wait (%p3747_p5), [#allocation9], 1024  }
  0xdd   : > { %3014 = vsyncadd (%p3748_p8), [#allocation9], 4294966272  ;;  %p3749_p3 = pmov %p3746_p1 }
  0xde   : > { %p3750_p12 = pmov %p3746_p1 }
  0xdf   : > { %3016 = dma.done.wait (%p3749_p3), [#allocation12], 512  }
  0xe0   : > { %3018 = vsyncadd (%p3750_p12), [#allocation12], 4294966784  ;;  %v3059_v0 = vmov 0.0|0.0   ;;  %vm3060_vm0 = vmmov 0   ;;  %v3061_v1 = vmov 0.0   ;;  %v668_v2 = vld [vmem:[#allocation8] sm:$0xff]  ;;  %v848_v32 = vlaneseq }
  0xe1   : > { %2585 = vmatprep.subr.bf16.mxu1 %v3059_v0  ;;  %2579 = vmatprep.subr.bf16.mxu0 %v3059_v0  ;;  %v669_v3 = vld [vmem:[#allocation8 + $0x8] sm:$0xff]  ;;  %v583_v4 = vld [vmem:[#allocation7] sm:$0xff]  ;;  %v670_v7 = vld [vmem:[#allocation8 + $0x10] sm:$0xff]  ;;  %vm594_vm1 = vcmask 261120   ;;  %s3062_s19 = smov 104   ;;  %s3063_s21 = smov 120  }
  0xe2   : > { %2514 = vmatprep.mubr.msk.f32.mxu1 %vm3060_vm0, %v3061_v1  ;;  %2503 = vmatprep.mubr.msk.f32.mxu0 %vm3060_vm0, %v3061_v1  ;;  %v2586_v5 = vpack.c.bf16 %v669_v3, %v668_v2  ;;  %v584_v6 = vld [vmem:[#allocation7 + $0x8] sm:$0xff]  ;;  %v671_v8 = vld [vmem:[#allocation8 + $0x18] sm:$0xff]  ;;  %v585_v10 = vld [vmem:[#allocation7 + $0x10] sm:$0xff]  ;;  %s3064_s12 = smov 112   ;;  %v3065_v30 = vmov 1983009808  }
  0xe3   : > { %v2580_v9 = vpack.c.bf16 %v584_v6, %v583_v4  ;;  %v586_v11 = vld [vmem:[#allocation7 + $0x18] sm:$0xff]  ;;  %v2589_v12 = vpack.c.bf16 %v671_v8, %v670_v7  ;;  %v3446_v15 = vld [vmem:[%s503_s7] sm:$0xff]  ;;  %v754_v26 = vld [vmem:[#allocation10 + $0x10] sm:$0xff]  ;;  %v846_v31 = vunpack.c.l.s4 %v3065_v30  ;;  %v3066_v33 = vmov 1934713408   ;;  %s3751_s11 = sld [smem:[#allocation28_spill]] }
  0xe4   : > { %2587 = vmatpush3.bf16.msra.mxu1 %v2586_v5  ;;  %v2583_v13 = vpack.c.bf16 %v586_v11, %v585_v10  ;;  %v582_v14 = vld [vmem:[%s512_s22] sm:$0xff]  ;;  %v2425_v16 = vld [vmem:[%s3701_s5] ss:$0 sm:$0xff]  ;;  %v753_v25 = vld [vmem:[#allocation10 + $0x8] sm:$0xff]  ;;  %v878_v34 = vunpack.c.l.s4 %v3066_v33  ;;  %v849_v36 = vshrl.u32 %v848_v32, 7  ;;  %vm1271_vm2 = vcmask 64512  }
  0xe5   : > { %2581 = vmatpush3.bf16.msra.mxu0 %v2580_v9  ;;  %2588 = vmatprep.subr.bf16.mxu1 %v3059_v0  ;;  %v2423_v18 = vld [vmem:[%s3699_s3] ss:$0 sm:$0xff]  ;;  %v755_v28 = vld [vmem:[#allocation10 + $0x18] sm:$0xff]  ;;  %v847_v35 = vunpack.c.0.s8 %v846_v31  ;;  %s580_s20 = scalar_lea.vmem [#allocation14], %s3408_s6  ;;  %s3067_s10 = smov 16   ;;  %vm2074_vm3 = vcmask 130048  }
  0xe6   : > { %2582 = vmatprep.subr.bf16.mxu0 %v3059_v0  ;;  %v752_v24 = vld [vmem:[#allocation10] sm:$0xff]  ;;  %v2595_v29 = vpack.c.bf16 %v755_v28, %v754_v26  ;;  %v879_v39 = vunpack.c.0.s8 %v878_v34  ;;  %s3068_s28 = smov 8   ;;  %s3069_s7 = smov 24   ;;  %vm2076_vm4 = vcmask 195584  }
  0xe7   : > { %v2592_v27 = vpack.c.bf16 %v753_v25, %v752_v24  ;;  %v3474_v40 = vsub.s32 %v847_v35, %v849_v36  ;;  %s3752_s15 = sld [smem:[#allocation23_spill]]  ;;  %s3753_s14 = sld [smem:[#allocation30_spill]] }
  0xe8   : > { %2590 = vmatpush3.bf16.msra.mxu1 %v2589_v12  ;;  %v3476_v47 = vsub.s32 %v879_v39, %v849_v36  ;;  %s2200_s8 = scalar_lea.sflag [#allocation15], %s3405_s4  ;;  %p3755_p13 = scmp.ne.s32.totalorder %s3740_s13, 0 }
  0xe9   : > { %2584 = vmatpush3.bf16.msra.mxu0 %v2583_v13  ;;  %2528 = vmatprep.subr.mxu1 %v3061_v1 }
  0xea   : > { %2591 = vmatprep.subr.bf16.mxu0 %v3059_v0 }
  0xeb   : > { %2515 = vmatmul.mubr.msk.f32.vlgmr.msra.gmra.mrb[0].mxu1 %vm594_vm1, %v582_v14 }
  0xec   : > { %2504 = vmatmul.mubr.msk.f32.vlgmr.msra.gmra.mrb[0].mxu0 %vm594_vm1, %v3446_v15  ;;  %2530 = vmatprep.mubr.msk.f32.mxu1 %vm3060_vm0, %v3061_v1 }
  0xed   : > { %2525 = vmatprep.mubr.msk.f32.mxu0 %vm3060_vm0, %v3061_v1  ;;  %2593 = vmatpush3.bf16.msra.mxu0 %v2592_v27  ;;  %s2455_s23 = sshll.u32 %s3752_s15, 7 }
  0xee   : > { %2594 = vmatprep.subr.bf16.mxu0 %v3059_v0 }
  0xf1   : > { %2596 = vmatpush3.bf16.msra.mxu0 %v2595_v29 }
  0xf2   : > { %2548 = vmatprep.subr.mxu0 %v3061_v1 }
  0xf4   : > { %2526 = vmatmul.mubr.msk.f32.vlgmr.msra.gmra.mrb[2].mxu0 %vm594_vm1, %v582_v14 }
  0xf5   : > { %2550 = vmatprep.mubr.msk.f32.mxu0 %vm3060_vm0, %v3061_v1 }
 0x1be   : > { %v748_v17 = vpop.f32.mrb[0].mxu1 }
 0x1bf   : > { %v749_v19 = vadd.f32 %v2425_v16, %v748_v17  ;;  %v2516_v20 = vpop.f32.mrb[1].mxu1  ;;  %v664_v21 = vpop.f32.mrb[0].mxu0 }
 0x1c0   : > { %v2505_v22 = vpop.f32.mrb[1].mxu0  ;;  %v665_v23 = vadd.f32 %v2423_v18, %v664_v21 }
 0x1c1   : > { %986 = vrot.lane.b32.xlu1 %v749_v19, %s3062_s19  ;;  %980 = vrot.lane.b32.xlu0 %v749_v19, %s3063_s21 }
 0x1c5   : > { %983 = vrot.lane.b32.xlu0 %v749_v19, %s3064_s12  ;;  %834 = vrot.lane.b32.xlu1 %v665_v23, %s3063_s21 }
 0x1c9   : > { %837 = vrot.lane.b32.xlu0 %v665_v23, %s3064_s12  ;;  %840 = vrot.lane.b32.xlu1 %v665_v23, %s3062_s19 }
 0x233   : > { %v987_v37 = vpop.permute.xlu1 %986  ;;  %v981_v38 = vpop.permute.xlu0 %980 }
 0x234   : > { %v1005_v41 = vcombine.low %v981_v38, %v987_v37  ;;  %v1006_v42 = vcombine.high %v981_v38, %v987_v37 }
 0x236   : > { %v1013_v48 = vrot.slane %v1005_v41, %v3474_v40  ;;  %v1020_v49 = vrot.slane %v1006_v42, %v3474_v40 }
 0x237   : > { %v984_v43 = vpop.permute.xlu0 %983  ;;  %v835_v44 = vpop.permute.xlu1 %834 }
 0x238   : > { %v989_v45 = vcombine.low %v749_v19, %v984_v43  ;;  %v990_v46 = vcombine.high %v749_v19, %v984_v43 }
 0x23a   : > { %v997_v50 = vrot.slane %v989_v45, %v3474_v40  ;;  %v1004_v51 = vrot.slane %v990_v46, %v3474_v40 }
 0x23b   : > { %v838_v52 = vpop.permute.xlu0 %837  ;;  %v841_v53 = vpop.permute.xlu1 %840 }
 0x23c   : > { %v1021_v54 = vcombine.low %v997_v50, %v1013_v48  ;;  %v1022_v55 = vcombine.high %v997_v50, %v1013_v48  ;;  %v1037_v56 = vcombine.low %v1004_v51, %v1020_v49  ;;  %v1038_v57 = vcombine.high %v1004_v51, %v1020_v49 }
 0x23d   : > { %v843_v58 = vcombine.low %v665_v23, %v838_v52  ;;  %v844_v59 = vcombine.high %v665_v23, %v838_v52  ;;  %v859_v60 = vcombine.low %v835_v44, %v841_v53  ;;  %v860_v61 = vcombine.high %v835_v44, %v841_v53 }
 0x23e   : > { %v1029_v62 = vrot.slane %v1021_v54, %v3476_v47  ;;  %v1036_v63 = vrot.slane %v1022_v55, %v3476_v47  ;;  %v1045_v2 = vrot.slane %v1037_v56, %v3476_v47  ;;  %v1052_v3 = vrot.slane %v1038_v57, %v3476_v47 }
 0x23f   : > { %v851_v4 = vrot.slane %v843_v58, %v3474_v40  ;;  %v858_v5 = vrot.slane %v844_v59, %v3474_v40  ;;  %v867_v6 = vrot.slane %v859_v60, %v3474_v40  ;;  %v874_v7 = vrot.slane %v860_v61, %v3474_v40  ;;  %v829_v59 = vpop.f32.mrb[2].mxu0 }
 0x240   : > { %v1057_v8 = vcombine.low %v1029_v62, %v1036_v63  ;;  %v2431_v9 = vcombine.high %v1029_v62, %v1036_v63  ;;  %v1073_v10 = vcombine.low %v1045_v2, %v1052_v3  ;;  %v2432_v11 = vcombine.high %v1045_v2, %v1052_v3  ;;  %v2527_v60 = vpop.f32.mrb[3].mxu0 }
 0x241   : > { %v875_v12 = vcombine.low %v851_v4, %v867_v6  ;;  %v876_v13 = vcombine.high %v851_v4, %v867_v6  ;;  %v891_v14 = vcombine.low %v858_v5, %v874_v7  ;;  %v892_v16 = vcombine.high %v858_v5, %v874_v7 }
 0x242   : > { %v1064_v17 = vrot.slane %v1057_v8, %v3474_v40  ;;  %v1072_v18 = vrot.slane %v2431_v9, %v3474_v40  ;;  %v1080_v19 = vrot.slane %v1073_v10, %v3474_v40  ;;  %v1088_v20 = vrot.slane %v2432_v11, %v3474_v40  ;;  %v2427_v11 = vld [vmem:[%s3751_s11] ss:$0 sm:$0xff]  ;;  %s3070_s11 = smov [#allocation14]  }
 0x243   : > { %v883_v21 = vrot.slane %v875_v12, %v3476_v47  ;;  %v890_v22 = vrot.slane %v876_v13, %v3476_v47  ;;  %v899_v23 = vrot.slane %v891_v14, %v3476_v47  ;;  %v906_v24 = vrot.slane %v892_v16, %v3476_v47 }
 0x244   : > { %v1089_v25 = vcombine.low %v1064_v17, %v1072_v18  ;;  %v1105_v26 = vcombine.low %v1080_v19, %v1088_v20  ;;  %v1090_v41 = vcombine.high %v1064_v17, %v1072_v18  ;;  %v1106_v42 = vcombine.high %v1080_v19, %v1088_v20 }
 0x245   : > { %v911_v27 = vcombine.low %v883_v21, %v890_v22  ;;  %v2429_v28 = vcombine.high %v883_v21, %v890_v22  ;;  %v927_v29 = vcombine.low %v899_v23, %v906_v24  ;;  %v2430_v30 = vcombine.high %v899_v23, %v906_v24 }
 0x246   : > { %v1097_v31 = vrot.slane %v1089_v25, %v3476_v47  ;;  %v1113_v32 = vrot.slane %v1105_v26, %v3476_v47  ;;  %v1104_v50 = vrot.slane %v1090_v41, %v3476_v47  ;;  %v1120_v51 = vrot.slane %v1106_v42, %v3476_v47 }
 0x247   : > { %v918_v33 = vrot.slane %v911_v27, %v3474_v40  ;;  %v926_v34 = vrot.slane %v2429_v28, %v3474_v40  ;;  %v934_v35 = vrot.slane %v927_v29, %v3474_v40  ;;  %v942_v36 = vrot.slane %v2430_v30, %v3474_v40 }
 0x248   : > { %v1121_v37 = vcombine.low %v1097_v31, %v1113_v32  ;;  %v1122_v49 = vcombine.high %v1097_v31, %v1113_v32  ;;  %v1123_v55 = vcombine.low %v1104_v50, %v1120_v51  ;;  %v1124_v57 = vcombine.high %v1104_v50, %v1120_v51 }
 0x249   : > { %v943_v38 = vcombine.low %v918_v33, %v926_v34  ;;  %v959_v39 = vcombine.low %v934_v35, %v942_v36  ;;  %v944_v45 = vcombine.high %v918_v33, %v926_v34  ;;  %v960_v46 = vcombine.high %v934_v35, %v942_v36 }
 0x24a   : > { %2529 = vmatpush3.xpose.msk.msra.mxu1 %vm1271_vm2, %v1121_v37  ;;  %v830_v12 = vadd.f32 %v2427_v11, %v829_v59 }
 0x24b   : > { %2533 = vmatprep.subr.mxu1 %v3061_v1  ;;  %v951_v43 = vrot.slane %v943_v38, %v3476_v47  ;;  %v967_v44 = vrot.slane %v959_v39, %v3476_v47  ;;  %v958_v53 = vrot.slane %v944_v45, %v3476_v47  ;;  %v974_v54 = vrot.slane %v960_v46, %v3476_v47 }
 0x24d   : > { %v975_v48 = vcombine.low %v951_v43, %v967_v44  ;;  %v976_v52 = vcombine.high %v951_v43, %v967_v44  ;;  %v977_v56 = vcombine.low %v958_v53, %v974_v54  ;;  %v978_v58 = vcombine.high %v958_v53, %v974_v54 }
 0x24f   : > { %2531 = vmatmul.mubr.msk.f32.vlgmr.msra.gmra.mrb[2].mxu1 %vm1271_vm2, %v975_v48 }
 0x250   : > { %2534 = vmatpush3.xpose.msk.msra.mxu1 %vm1271_vm2, %v1122_v49  ;;  %2535 = vmatprep.mubr.msk.f32.mxu1 %vm3060_vm0, %v3061_v1 }
 0x251   : > { %2538 = vmatprep.subr.mxu1 %v3061_v1 }
 0x253   : > { %2536 = vmatmul.mubr.msk.f32.vlgmr.msra.gmra.mrb[4].mxu1 %vm1271_vm2, %v976_v52 }
 0x254   : > { %2539 = vmatpush3.xpose.msk.msra.mxu1 %vm1271_vm2, %v1123_v55  ;;  %2540 = vmatprep.mubr.msk.f32.mxu1 %vm3060_vm0, %v3061_v1 }
 0x255   : > { %2543 = vmatprep.subr.mxu1 %v3061_v1 }
 0x257   : > { %2541 = vmatmul.mubr.msk.f32.vlgmr.msra.gmra.mrb[6].mxu1 %vm1271_vm2, %v977_v56 }
 0x258   : > { %2544 = vmatpush3.xpose.msk.msra.mxu1 %vm1271_vm2, %v1124_v57  ;;  %2545 = vmatprep.mubr.msk.f32.mxu1 %vm3060_vm0, %v3061_v1 }
 0x259   : > { %2553 = vmatprep.subr.mxu1 %v3061_v1 }
 0x25b   : > { %2546 = vmatmul.mubr.msk.f32.vlgmr.msra.gmra.mrb[8].mxu1 %vm1271_vm2, %v978_v58 }
 0x25c   : > { %2555 = vmatprep.mubr.msk.f32.mxu1 %vm3060_vm0, %v3061_v1 }
 0x322   : > { %v1344_v61 = vpop.f32.mrb[2].mxu1 }
 0x323   : > { %v2532_v62 = vpop.f32.mrb[3].mxu1  ;;  %v1576_v63 = vsel %vm1271_vm2, %v1344_v61, -inf }
 0x324   : > { %1577 = vmax.xlane.f32.xlu0 %v1576_v63 }
 0x326   : > { %v1420_v2 = vpop.f32.mrb[4].mxu1 }
 0x327   : > { %v2537_v3 = vpop.f32.mrb[5].mxu1  ;;  %v1579_v4 = vsel %vm1271_vm2, %v1420_v2, -inf }
 0x328   : > { %1580 = vmax.xlane.f32.xlu1 %v1579_v4 }
 0x32a   : > { %v1496_v5 = vpop.f32.mrb[6].mxu1 }
 0x32b   : > { %v2542_v6 = vpop.f32.mrb[7].mxu1  ;;  %v1582_v7 = vsel %vm1271_vm2, %v1496_v5, -inf }
 0x32c   : > { %1583 = vmax.xlane.f32.xlu0 %v1582_v7 }
 0x32e   : > { %v1572_v8 = vpop.f32.mrb[8].mxu1 }
 0x32f   : > { %v2547_v9 = vpop.f32.mrb[9].mxu1  ;;  %v1585_v10 = vsel %vm1271_vm2, %v1572_v8, -inf }
 0x330   : > { %1586 = vmax.xlane.f32.xlu0 %v1585_v10 }
 0x339   : > { %1126 = vrot.lane.b32.xlu1 %v830_v12, %s3063_s21 }
 0x3b1   : > { %v1578_v13 = vpop.xlane.xlu0 %1577 }
 0x3b2   : > { %v1588_v14 = vsub.f32 %v1344_v61, %v1578_v13 }
 0x3b4   : > { %v1592_v16 = vmul.f32 1.442695, %v1588_v14 }
 0x3b5   : > { %v1581_v17 = vpop.xlane.xlu1 %1580 }
 0x3b6   : > { %2729 = vpow2.f32 %v1592_v16  ;;  %v1589_v18 = vsub.f32 %v1420_v2, %v1581_v17 }
 0x3b8   : > { %v1594_v19 = vmul.f32 1.442695, %v1589_v18 }
 0x3b9   : > { %v1584_v20 = vpop.xlane.xlu0 %1583  ;;  %v1127_v34 = vpop.permute.xlu1 %1126 }
 0x3ba   : > { %2731 = vpow2.f32 %v1594_v19  ;;  %v1590_v21 = vsub.f32 %v1496_v5, %v1584_v20 }
 0x3bc   : > { %v1596_v22 = vmul.f32 1.442695, %v1590_v21 }
 0x3bd   : > { %v1587_v23 = vpop.xlane.xlu0 %1586 }
 0x3be   : > { %2733 = vpow2.f32 %v1596_v22  ;;  %v1591_v24 = vsub.f32 %v1572_v8, %v1587_v23 }
 0x3c0   : > { %v2730_v25 = vpop.eup %2729  ;;  %v1598_v26 = vmul.f32 1.442695, %v1591_v24 }
 0x3c1   : > { %v1600_v27 = vsel %vm1271_vm2, %v2730_v25, 0.0 }
 0x3c2   : > { %2735 = vpow2.f32 %v1598_v26  ;;  %1601 = vadd.xlane.f32.xlu1 %v1600_v27 }
 0x3c4   : > { %v2732_v28 = vpop.eup %2731 }
 0x3c5   : > { %v1603_v29 = vsel %vm1271_vm2, %v2732_v28, 0.0 }
 0x3c6   : > { %1604 = vadd.xlane.f32.xlu0 %v1603_v29 }
 0x3c8   : > { %v2734_v30 = vpop.eup %2733 }
 0x3c9   : > { %v1606_v31 = vsel %vm1271_vm2, %v2734_v30, 0.0 }
 0x3ca   : > { %1607 = vadd.xlane.f32.xlu1 %v1606_v31 }
 0x3cc   : > { %v2736_v32 = vpop.eup %2735 }
 0x3cd   : > { %v1609_v33 = vsel %vm1271_vm2, %v2736_v32, 0.0 }
 0x3ce   : > { %1610 = vadd.xlane.f32.xlu0 %v1609_v33 }
 0x3db   : > { %1132 = vrot.lane.b32.xlu1 %v830_v12, %s3062_s19  ;;  %s3754_s19 = sld [smem:[#allocation34_spill]] }
 0x3e1   : > { %s3612_s21 = scalar_lea.hbm %s3754_s19, %s2455_s23 }
 0x3e4   : > { %1129 = vrot.lane.b32.xlu0 %v830_v12, %s3064_s12  ;;  %s2228_s12 = sshll.u32 %s580_s20, 4  ;;  %s2229_s12 = int_to_ptr.vmem [resolvable:$true] %s2228_s12 }
 0x3e5   : > { %s2919_s2 = scalar_lea.vmem %s2229_s12, 128 }
 0x3e6   : > { %p2920_p6 = scmp.ne.s32.totalorder %s2229_s12, %s2919_s2 }
 0x3e8   : > { %p2921_p4 = pnand %p2920_p6, %p3755_p13 }
 0x3ea   : > { %p2922_p9 = pneg %p2921_p4 }
 0x44f   : > { %v1602_v35 = vpop.xlane.xlu1 %1601 }
 0x450   : > { %2737 = vrcp.f32 %v1602_v35  ;;  %v2079_v35 = vld [vmem:[#allocation11 + $0x8] sm:$0xff] }
 0x453   : > { %v1605_v36 = vpop.xlane.xlu0 %1604 }
 0x454   : > { %2739 = vrcp.f32 %v1605_v36 }
 0x457   : > { %v1608_v37 = vpop.xlane.xlu1 %1607 }
 0x458   : > { %2741 = vrcp.f32 %v1608_v37 }
 0x45a   : > { %v2738_v41 = vpop.eup %2737 }
 0x45b   : > { %v1611_v38 = vpop.xlane.xlu0 %1610  ;;  %v1133_v39 = vpop.permute.xlu1 %1132  ;;  %v1620_v50 = vmul.f32 %v2738_v41, %v2730_v25 }
 0x45c   : > { %2743 = vrcp.f32 %v1611_v38  ;;  %v1151_v43 = vcombine.low %v1127_v34, %v1133_v39  ;;  %v1152_v44 = vcombine.high %v1127_v34, %v1133_v39  ;;  %v2078_v34 = vld [vmem:[#allocation11] sm:$0xff] }
 0x45d   : > { %v1624_v62 = vsel %vm1271_vm2, %v1620_v50, 0.0  ;;  %v2598_v36 = vpack.c.bf16 %v2079_v35, %v2078_v34 }
 0x45e   : > { %v2740_v42 = vpop.eup %2739  ;;  %v1159_v52 = vrot.slane %v1151_v43, %v3474_v40  ;;  %v1166_v53 = vrot.slane %v1152_v44, %v3474_v40 }
 0x45f   : > { %v1621_v45 = vmul.f32 %v2740_v42, %v2732_v28  ;;  %v1130_v46 = vpop.permute.xlu0 %1129 }
 0x460   : > { %v1135_v48 = vcombine.low %v830_v12, %v1130_v46  ;;  %v1136_v49 = vcombine.high %v830_v12, %v1130_v46 }
 0x461   : > { %v1625_v56 = vsel %vm1271_vm2, %v1621_v45, 0.0 }
 0x462   : > { %v2742_v51 = vpop.eup %2741  ;;  %v1143_v54 = vrot.slane %v1135_v48, %v3474_v40  ;;  %v1150_v55 = vrot.slane %v1136_v49, %v3474_v40  ;;  %v1626_v3 = vadd.f32 %v1625_v56, %v1624_v62 }
 0x463   : > { %v1622_v57 = vmul.f32 %v2742_v51, %v2734_v30 }
 0x464   : > { %v1167_v58 = vcombine.low %v1143_v54, %v1159_v52  ;;  %v1168_v59 = vcombine.high %v1143_v54, %v1159_v52  ;;  %v1183_v60 = vcombine.low %v1150_v55, %v1166_v53  ;;  %v1184_v61 = vcombine.high %v1150_v55, %v1166_v53 }
 0x465   : > { %v1627_v63 = vsel %vm1271_vm2, %v1622_v57, 0.0 }
 0x466   : > { %v2744_v2 = vpop.eup %2743  ;;  %v1175_v4 = vrot.slane %v1167_v58, %v3476_v47  ;;  %v1182_v5 = vrot.slane %v1168_v59, %v3476_v47  ;;  %v1191_v6 = vrot.slane %v1183_v60, %v3476_v47  ;;  %v1198_v8 = vrot.slane %v1184_v61, %v3476_v47  ;;  %v2081_v58 = vld [vmem:[#allocation11 + $0x18] sm:$0xff] }
 0x467   : > { %v1623_v7 = vmul.f32 %v2744_v2, %v2736_v32  ;;  %v1628_v9 = vadd.f32 %v1627_v63, %v1626_v3 }
 0x468   : > { %v1203_v10 = vcombine.low %v1175_v4, %v1182_v5  ;;  %v2433_v11 = vcombine.high %v1175_v4, %v1182_v5  ;;  %v1219_v13 = vcombine.low %v1191_v6, %v1198_v8  ;;  %v2434_v14 = vcombine.high %v1191_v6, %v1198_v8 }
 0x469   : > { %v1629_v12 = vsel %vm1271_vm2, %v1623_v7, 0.0 }
 0x46a   : > { %v1210_v16 = vrot.slane %v1203_v10, %v3474_v40  ;;  %v1218_v17 = vrot.slane %v2433_v11, %v3474_v40  ;;  %v1630_v18 = vadd.f32 %v1629_v12, %v1628_v9  ;;  %v1226_v19 = vrot.slane %v1219_v13, %v3474_v40 }
 0x46b   : > { %v1234_v20 = vrot.slane %v2434_v14, %v3474_v40 }
 0x46c   : > { %v1235_v21 = vcombine.low %v1210_v16, %v1218_v17  ;;  %v1236_v22 = vcombine.high %v1210_v16, %v1218_v17  ;;  %v1631_v23 = vmul.f32 0.25, %v1630_v18 }
 0x46d   : > { %v1251_v24 = vcombine.low %v1226_v19, %v1234_v20  ;;  %v1252_v25 = vcombine.high %v1226_v19, %v1234_v20 }
 0x46e   : > { %v1243_v26 = vrot.slane %v1235_v21, %v3476_v47  ;;  %1632 = vst.msk [vmem:[%s580_s20] sm:$0xff] %vm1271_vm2, %v1631_v23  ;;  %v1250_v28 = vrot.slane %v1236_v22, %v3476_v47 }
 0x46f   : > { %v1259_v27 = vrot.slane %v1251_v24, %v3476_v47  ;;  %v1266_v29 = vrot.slane %v1252_v25, %v3476_v47 }
 0x471   : > { %v1267_v30 = vcombine.low %v1243_v26, %v1259_v27  ;;  %v1268_v31 = vcombine.high %v1243_v26, %v1259_v27  ;;  %v1269_v32 = vcombine.low %v1250_v28, %v1266_v29  ;;  %v1270_v33 = vcombine.high %v1250_v28, %v1266_v29  ;;  %v2449_v27 = vld [vmem:[%s3753_s14] ss:$0 sm:$0xff] }
 0x473   : > { %2549 = vmatpush3.msra.mxu0 %v1267_v30  ;;  %2554 = vmatpush3.msra.mxu1 %v1268_v31 }
 0x474   : > { %2551 = vmatmul.mubr.msk.f32.vlgmr.msra.gmra.mrb[4].mxu0 %vm1271_vm2, %v1620_v50  ;;  %2556 = vmatmul.mubr.msk.f32.vlgmr.msra.gmra.mrb[10].mxu1 %vm1271_vm2, %v1621_v45 }
 0x475   : > { %2558 = vmatprep.subr.mxu0 %v3061_v1  ;;  %2563 = vmatprep.subr.mxu1 %v3061_v1 }
 0x476   : > { %2559 = vmatpush3.msra.mxu0 %v1269_v32  ;;  %2564 = vmatpush3.msra.mxu1 %v1270_v33 }
 0x477   : > { %2560 = vmatprep.mubr.msk.f32.mxu0 %vm3060_vm0, %v3061_v1  ;;  %2565 = vmatprep.mubr.msk.f32.mxu1 %vm3060_vm0, %v3061_v1 }
 0x478   : > { %2561 = vmatmul.mubr.msk.f32.vlgmr.msra.gmra.mrb[6].mxu0 %vm1271_vm2, %v1622_v57  ;;  %2566 = vmatmul.mubr.msk.f32.vlgmr.msra.gmra.mrb[12].mxu1 %vm1271_vm2, %v1623_v7  ;;  %v2080_v57 = vld [vmem:[#allocation11 + $0x10] sm:$0xff] }
 0x479   : > { %2597 = vmatprep.subr.bf16.mxu0 %v3059_v0  ;;  %2576 = vmatprep.mubr.msk.f32.mxu0 %vm3060_vm0, %v3061_v1  ;;  %v2601_v63 = vpack.c.bf16 %v2081_v58, %v2080_v57 }
 0x47a   : > { %2599 = vmatpush3.bf16.msra.mxu0 %v2598_v36 }
 0x47b   : > { %2600 = vmatprep.subr.bf16.mxu0 %v3059_v0 }
 0x47e   : > { %2602 = vmatpush3.bf16.msra.mxu0 %v2601_v63 }
 0x547   : > { %v1702_v37 = vpop.f32.mrb[4].mxu0  ;;  %v1775_v38 = vpop.f32.mrb[10].mxu1 }
 0x548   : > { %v2552_v39 = vpop.f32.mrb[5].mxu0  ;;  %v2557_v41 = vpop.f32.mrb[11].mxu1 }
 0x54b   : > { %v1848_v42 = vpop.f32.mrb[6].mxu0  ;;  %v1921_v43 = vpop.f32.mrb[12].mxu1 }
 0x54c   : > { %v1925_v44 = vcombine.low %v1702_v37, %v1848_v42  ;;  %v1926_v45 = vcombine.high %v1702_v37, %v1848_v42  ;;  %v1941_v46 = vcombine.low %v1775_v38, %v1921_v43  ;;  %v1942_v48 = vcombine.high %v1775_v38, %v1921_v43  ;;  %v2562_v49 = vpop.f32.mrb[7].mxu0  ;;  %v2567_v50 = vpop.f32.mrb[13].mxu1 }
 0x54e   : > { %v1933_v1 = vrot.slane %v1925_v44, %v3474_v40  ;;  %v1940_v51 = vrot.slane %v1926_v45, %v3474_v40  ;;  %v1949_v52 = vrot.slane %v1941_v46, %v3474_v40  ;;  %v1956_v0 = vrot.slane %v1942_v48, %v3474_v40 }
 0x550   : > { %v1957_v53 = vcombine.low %v1933_v1, %v1949_v52  ;;  %v1958_v54 = vcombine.high %v1933_v1, %v1949_v52  ;;  %v1973_v55 = vcombine.low %v1940_v51, %v1956_v0  ;;  %v1974_v56 = vcombine.high %v1940_v51, %v1956_v0 }
 0x552   : > { %v1965_v59 = vrot.slane %v1957_v53, %v3476_v47  ;;  %v1972_v60 = vrot.slane %v1958_v54, %v3476_v47  ;;  %v1981_v61 = vrot.slane %v1973_v55, %v3476_v47  ;;  %v1988_v62 = vrot.slane %v1974_v56, %v3476_v47 }
 0x554   : > { %v1993_v2 = vcombine.low %v1965_v59, %v1972_v60  ;;  %v2447_v3 = vcombine.high %v1965_v59, %v1972_v60  ;;  %v2009_v4 = vcombine.low %v1981_v61, %v1988_v62  ;;  %v2448_v5 = vcombine.high %v1981_v61, %v1988_v62 }
 0x556   : > { %v2000_v6 = vrot.slane %v1993_v2, %v3474_v40  ;;  %v2008_v7 = vrot.slane %v2447_v3, %v3474_v40  ;;  %v2016_v8 = vrot.slane %v2009_v4, %v3474_v40  ;;  %v2024_v9 = vrot.slane %v2448_v5, %v3474_v40 }
 0x558   : > { %v2026_v10 = vcombine.high %v2000_v6, %v2008_v7  ;;  %v2042_v11 = vcombine.high %v2016_v8, %v2024_v9  ;;  %v2025_v12 = vcombine.low %v2000_v6, %v2008_v7  ;;  %v2041_v13 = vcombine.low %v2016_v8, %v2024_v9 }
 0x55a   : > { %v2040_v14 = vrot.slane %v2026_v10, %v3476_v47  ;;  %v2056_v16 = vrot.slane %v2042_v11, %v3476_v47  ;;  %v2033_v17 = vrot.slane %v2025_v12, %v3476_v47  ;;  %v2049_v18 = vrot.slane %v2041_v13, %v3476_v47 }
 0x55c   : > { %v2059_v19 = vcombine.low %v2040_v14, %v2056_v16  ;;  %v2058_v20 = vcombine.high %v2033_v17, %v2049_v18  ;;  %v2060_v21 = vcombine.high %v2040_v14, %v2056_v16  ;;  %v2057_v22 = vcombine.low %v2033_v17, %v2049_v18 }
 0x55e   : > { %2066 = vrot.lane.b32.xlu0 %v2059_v19, %s3067_s10  ;;  %2062 = vrot.lane.b32.xlu1 %v2058_v20, %s3068_s28  ;;  %s2923_s10 = sshll.u32 %s3070_s11, 4  ;;  %s2924_s10 = int_to_ptr.vmem [resolvable:$false] %s2923_s10 }
 0x55f   : > { %s2925_s28 = scalar_lea.vmem %s2924_s10, 256  ;;  %p2926_p0 = scmp.lt.s32.totalorder %s2229_s12, %s2924_s10 }
 0x560   : > { %p2927_p7 = scmp.lt.s32.totalorder %s2925_s28, %s2919_s2 }
 0x562   : > { %2070 = vrot.lane.b32.xlu1 %v2060_v21, %s3069_s7  ;;  %p2928_p11 = por %p2927_p7, %p2926_p0 }
 0x564   : > { %p2929_p2 = pnand %p2928_p11, %p2922_p9 }
 0x5d0   : > { %v2063_v40 = vpop.permute.xlu1 %2062  ;;  %v2067_v23 = vpop.permute.xlu0 %2066 }
 0x5d1   : > { %v2073_v24 = vsel %vm1271_vm2, %v2057_v22, %v2063_v40 }
 0x5d2   : > { %v2075_v26 = vsel %vm2074_vm3, %v2073_v24, %v2067_v23 }
 0x5d4   : > { %v2071_v25 = vpop.permute.xlu1 %2070 }
 0x5d5   : > { %v2077_v47 = vsel %vm2076_vm4, %v2075_v26, %v2071_v25 }
 0x5d6   : > { %2577 = vmatmul.mubr.msk.f32.vlgmr.msra.gmra.mrb[8].mxu0 %vm594_vm1, %v2077_v47 }
 0x6a9   : > { %v2158_v28 = vpop.f32.mrb[8].mxu0 }
 0x6aa   : > { %v2159_v29 = vadd.f32 %v2449_v27, %v2158_v28  ;;  %v2578_v30 = vpop.f32.mrb[9].mxu0 }
 0x6ac   : > { %v2162_v31 = vadd.f32 %v2159_v29, %v3446_v15 }
 0x6ae   : > { %v2163_v32 = vsel %vm594_vm1, %v2162_v31, 0.0 }
 0x6af   : > { %2164 = vadd.xlane.f32.xlu0 %v2163_v32 }
 0x73c   : > { %v2165_v33 = vpop.xlane.xlu0 %2164 }
 0x73d   : > { %v2167_v34 = vmul.f32 0.03125, %v2165_v33 }
 0x73f   : > { %v2168_v35 = vsub.f32 %v2162_v31, %v2167_v34 }
 0x741   : > { %v2169_v36 = vmul.f32 %v2168_v35, %v2168_v35 }
 0x743   : > { %v2170_v37 = vsel %vm594_vm1, %v2169_v36, 0.0 }
 0x744   : > { %2171 = vadd.xlane.f32.xlu1 %v2170_v37 }
 0x745   : > { %2932 = shalt.err (!%p2929_p2)
}
 0x746   : > { %s2933_s20 = scalar_lea.hbm %s3612_s21, 128  ;;  %s2937_s22 = scalar_lea.hbm %s3754_s19, 256 }
 0x747   : > { %p2934_p10 = scmp.ne.s32.totalorder %s3612_s21, %s2933_s20  ;;  %p2938_p8 = scmp.lt.u32.totalorder %s3612_s21, %s3754_s19 }
 0x748   : > { %p2939_p3 = scmp.lt.u32.totalorder %s2937_s22, %s2933_s20  ;;  %p2941_p6 = scmp.lt.u32.totalorder %s2933_s20, %s3612_s21 }
 0x749   : > { %p2935_p1 = pnand %p2934_p10, %p3755_p13 }
 0x74a   : > { %p2940_p12 = por %p2939_p3, %p2938_p8 }
 0x74b   : > { %p2936_p5 = pneg %p2935_p1 }
 0x74c   : > { %p2942_p4 = por %p2941_p6, %p2940_p12 }
 0x74e   : > { %p2943_p9 = pnand %p2942_p4, %p2936_p5 }
 0x750   : > { %2946 = shalt.err (!%p2943_p9)
}
 0x751   : > { %2624 = dma.vmem_to_hbm [thread:$0]  (%p3755_p13), %s2229_s12, 128, %s3612_s21, %s2200_s8  }
 0x752   : > { %s3756_s11 = sld [smem:[#allocation31_spill]]  ;;  %s3757_s20 = sld [smem:[#allocation32_spill]] }
 0x753   : > { %s573_s7 = scalar_lea.vmem [#allocation13], %s3408_s6  ;;  %s3758_s8 = sld [smem:[#allocation33_spill]] }
 0x754   : > { %s2214_s9 = sshll.u32 %s573_s7, 4  ;;  %s2195_s14 = scalar_lea.sflag [#allocation4], %s3405_s4  ;;  %s3648_s9 = int_to_ptr.vmem [resolvable:$true] %s2214_s9 }
 0x755   : > { %s2947_s18 = scalar_lea.vmem %s3648_s9, 128  ;;  %s3071_s6 = smov [#allocation13]  }
 0x756   : > { %p2948_p0 = scmp.ne.s32.totalorder %s3648_s9, %s2947_s18  ;;  %s2951_s15 = sshll.u32 %s3071_s6, 4  ;;  %s2952_s15 = int_to_ptr.vmem [resolvable:$false] %s2951_s15 }
 0x757   : > { %s2953_s17 = scalar_lea.vmem %s2952_s15, 256  ;;  %p2954_p2 = scmp.lt.s32.totalorder %s3648_s9, %s2952_s15 }
 0x758   : > { %v2451_v42 = vld [vmem:[%s3756_s11] ss:$0 sm:$0xff]  ;;  %p2949_p7 = pnand %p2948_p0, %p3755_p13  ;;  %p2955_p10 = scmp.lt.s32.totalorder %s2953_s17, %s2947_s18 }
 0x759   : > { %v2452_v44 = vld [vmem:[%s3757_s20] ss:$0 sm:$0xff]  ;;  %s3646_s22 = scalar_lea.hbm %s3758_s8, %s2455_s23 }
 0x75a   : > { %p2950_p11 = pneg %p2949_p7  ;;  %p2956_p1 = por %p2955_p10, %p2954_p2 }
 0x75c   : > { %p2957_p5 = pnand %p2956_p1, %p2950_p11 }
 0x7d1   : > { %v2172_v15 = vpop.xlane.xlu1 %2171 }
 0x7d2   : > { %v2173_v38 = vmul.f32 0.03125, %v2172_v15 }
 0x7d4   : > { %v2174_v39 = vadd.f32 1e-05, %v2173_v38 }
 0x7d6   : > { %2745 = vrsqrt.f32 %v2174_v39 }
 0x7e0   : > { %v2746_v41 = vpop.eup %2745 }
 0x7e1   : > { %v2176_v43 = vmul.f32 %v2746_v41, %v2168_v35 }
 0x7e3   : > { %v2184_v45 = vmul.f32 %v2451_v42, %v2176_v43 }
 0x7e5   : > { %v2192_v46 = vadd.f32 %v2452_v44, %v2184_v45 }
 0x7e7   : > { %2193 = vst.msk [vmem:[%s573_s7] sm:$0xff] %vm594_vm1, %v2192_v46 }
 0x7e8   : > { %2960 = shalt.err (!%p2957_p5)
}
 0x7e9   : > { %s2961_s4 = scalar_lea.hbm %s3646_s22, 128  ;;  %s2965_s11 = scalar_lea.hbm %s3758_s8, 256 }
 0x7ea   : > { %p2962_p8 = scmp.ne.s32.totalorder %s3646_s22, %s2961_s4  ;;  %p2966_p6 = scmp.lt.u32.totalorder %s3646_s22, %s3758_s8 }
 0x7eb   : > { %p2967_p4 = scmp.lt.u32.totalorder %s2965_s11, %s2961_s4  ;;  %p2969_p0 = scmp.lt.u32.totalorder %s2961_s4, %s3646_s22 }
 0x7ec   : > { %p2963_p3 = pnand %p2962_p8, %p3755_p13 }
 0x7ed   : > { %p2968_p9 = por %p2967_p4, %p2966_p6 }
 0x7ee   : > { %p2964_p12 = pneg %p2963_p3 }
 0x7ef   : > { %p2970_p7 = por %p2969_p0, %p2968_p9 }
 0x7f1   : > { %p2971_p11 = pnand %p2970_p7, %p2964_p12 }
 0x7f3   : > { %2974 = shalt.err (!%p2971_p11)
}
 0x7f4   : > { %2623 = dma.vmem_to_hbm [thread:$0]  (%p3755_p13), %s3648_s9, 128, %s3646_s22, %s2195_s14  }
 0x7f5 PF: > { %s2240_s20 = sand.u32 1, %s3029_s25   ;;  %p3759_p2 = scmp.ne.s32.totalorder %s3741_s16, 0 }
 0x7f6   : > { %p3760_p10 = scmp.ge.s32.totalorder %s3049_s30, 2  ;;  %s2241_s7 = scalar_lea.sflag [#allocation4], %s2240_s20 }
 0x7f8   : > { %p2648_p1 = pnand %p3760_p10, %p3759_p2 }
 0x7fa   : > { %3020 = dma.done.wait (!%p2648_p1), %s2241_s7, 128  }
 0x7fb   : > { %3022 = vsyncadd (!%p2648_p1), %s2241_s7, 4294967168  ;;  %s2250_s21 = scalar_lea.sflag [#allocation15], %s2240_s20 }
 0x7fc   : > { %3024 = dma.done.wait (!%p2648_p1), %s2250_s21, 128  }
 0x7fd   : > { %3026 = vsyncadd (!%p2648_p1), %s2250_s21, 4294967168  ;;  %s38_s30 = sadd.s32 1, %s3049_s30   ;;  %s3761_s13 = sld [smem:[#allocation24_spill]] }
 0x7fe   : > { %p35_p5 = scmp.ge.s32.totalorder %s38_s30, 4   ;;  %s3762_s25 = smov %s3033_s26 }
 0x7ff   : > { %s3763_s26 = smov %s3037_s27  ;;  %s3764_s27 = smov %s3326_s24 }
 0x800   : > { %s3765_s28 = smov %s3045_s29  ;;  %37 = sbr.rel (!%p35_p5) target bundleno = 23 (0x17), region = 159 }
 0x803   : > { %s3766_s29 = smov %s3761_s13 }
 0x807   :  { %2255 = vsyncpa [#allocation3], 1 }
 0x808   :  { %2257 = vsyncpa [#allocation3 + $0x1], 1 }
 0x809   :  { %2258 = vsyncpa [#allocation6], 1 }
 0x80a   :  { %2260 = vsyncpa [#allocation6 + $0x1], 1 }
 0x80b   :  { %2261 = vsyncpa [#allocation9], 1 }
 0x80c   :  { %2262 = vsyncpa [#allocation12], 1 }
 0x80d   :  { %2263 = vsyncpa [#allocation4], 1 }
 0x80e   :  { %2265 = vsyncpa [#allocation4 + $0x1], 1 }
 0x80f   :  { %2266 = vsyncpa [#allocation15], 1 }
 0x810   :  { %2268 = vsyncpa [#allocation15 + $0x1], 1 }

</bundles_post_ra>
